<compile_context>
chip_gen: v5e
topology: v5e:2x2
jax: 0.10.0
libtpu: 0.0.40
codegen_flags: <defaults>
</compile_context>

<pallas_src>
import math
import jax
import jax.numpy as jnp
from jax.experimental import pallas as pl
from jax.experimental.pallas import tpu as pltpu

# ---------------- small synthetic BERT config ----------------
VOCAB = 100
SEQ = 8
HIDDEN = 32
N_HEADS = 4
HEAD_DIM = HIDDEN // N_HEADS
INTER = 64
N_LAYERS = 2
NUM_LABELS = 4
MAX_POS = 64
LN_EPS = 1e-12

WEIGHT_NAMES = ("emb_ln_g", "emb_ln_b",
                "wqkv", "bqkv", "wo", "bo", "ln1g", "ln1b",
                "w1", "b1", "w2", "b2", "ln2g", "ln2b",
                "cls_w", "cls_b")


# ---------------- kernel helpers ----------------

def _layer_norm(x, g, b):
    mu = jnp.mean(x, axis=-1, keepdims=True)
    var = jnp.mean((x - mu) ** 2, axis=-1, keepdims=True)
    return (x - mu) * jax.lax.rsqrt(var + LN_EPS) * g + b


def _dot(a, w):
    # bf16 operands on the MXU, f32 accumulation; element-wise math stays f32.
    return jnp.dot(a.astype(w.dtype), w, preferred_element_type=jnp.float32)


def _split_heads(t):
    # [S, H] -> [N_HEADS, S, HEAD_DIM]  (head axis leading for batched einsum)
    return jnp.transpose(t.reshape(SEQ, N_HEADS, HEAD_DIM), (1, 0, 2))


# ---------------- fused forward kernel ----------------

def fused_forward_kernel(emb_ref, mask_ref, labels_ref,
                         embg_ref, embb_ref,
                         wqkv_ref, bqkv_ref, wo_ref, bo_ref,
                         ln1g_ref, ln1b_ref, w1_ref, b1_ref, w2_ref, b2_ref,
                         ln2g_ref, ln2b_ref, wc_ref, bc_ref,
                         logits_ref, nll_sum_ref, valid_cnt_ref):
    # ---- embeddings LayerNorm (folded into the fused kernel) ----
    x = _layer_norm(emb_ref[0], embg_ref[...], embb_ref[...])        # [S, H] f32
    addmask = mask_ref[0]                                            # [1, S]

    # ---- transformer layers (static unroll; weights stacked [L, ...]) ----
    for l in range(N_LAYERS):
        qkv = _dot(x, wqkv_ref[l]) + bqkv_ref[l]                     # [S, 3H]
        qh = _split_heads(qkv[:, 0:HIDDEN])                          # [nH, S, dH]
        kh = _split_heads(qkv[:, HIDDEN:2 * HIDDEN])
        vh = _split_heads(qkv[:, 2 * HIDDEN:3 * HIDDEN])
        # 1/sqrt(HEAD_DIM) is pre-folded into Wq/bq -> no runtime scale mul.
        s = jnp.einsum('hqd,hkd->hqk', qh, kh,
                       preferred_element_type=jnp.float32)           # [nH, S, S]
        s = s + addmask                                              # broadcast over heads/queries
        s = s - jnp.max(s, axis=-1, keepdims=True)
        p = jnp.exp(s)
        p = p * pl.reciprocal(jnp.sum(p, axis=-1, keepdims=True), approx=True)
        ctx = jnp.einsum('hqk,hkd->hqd', p, vh,
                         preferred_element_type=jnp.float32)         # [nH, S, dH]
        ctx = jnp.transpose(ctx, (1, 0, 2)).reshape(SEQ, HIDDEN)     # [S, H]
        attn = _dot(ctx, wo_ref[l]) + bo_ref[l]

        h1 = _layer_norm(x + attn, ln1g_ref[l], ln1b_ref[l])

        ff = _dot(h1, w1_ref[l]) + b1_ref[l]
        # TODO(synk): HF BERT uses exact (erf) GELU; tanh-approx GELU used here.
        ff = jax.nn.gelu(ff)
        ff = _dot(ff, w2_ref[l]) + b2_ref[l]

        x = _layer_norm(h1 + ff, ln2g_ref[l], ln2b_ref[l])

    # ---- token classifier + per-label-set CE pieces (ignore_index = -100) ----
    logits = _dot(x, wc_ref[...]) + bc_ref[...]                      # [S, 4]
    logits_ref[0] = logits

    m = jnp.max(logits, axis=-1, keepdims=True)
    lse = jnp.log(jnp.sum(jnp.exp(logits - m), axis=-1, keepdims=True)) + m
    logp = logits - lse                                              # [S, 4]

    labels = labels_ref[0]                                           # [3, S] int32
    valid = labels >= 0                                              # -100 => ignored
    safe = jnp.where(valid, labels, 0)
    cls_idx = jax.lax.broadcasted_iota(jnp.int32, (3, SEQ, NUM_LABELS), 2)
    onehot = cls_idx == safe[:, :, None]                             # [3, S, 4]
    nll = -jnp.sum(jnp.where(onehot, logp[None, :, :], 0.0), axis=-1)  # [3, S]
    nll = jnp.where(valid, nll, 0.0)
    # In-kernel sequence reduction (XLU slot) -> tiny [3, 1] outputs per batch.
    nll_sum_ref[0] = jnp.sum(nll, axis=-1, keepdims=True)            # [3, 1]
    valid_cnt_ref[0] = jnp.sum(valid.astype(jnp.float32), axis=-1,
                               keepdims=True)                        # [3, 1]


# ---------------- pallas_call wrapper ----------------

def _full_spec(arr):
    nd = arr.ndim
    return pl.BlockSpec(arr.shape, lambda b, _nd=nd: (0,) * _nd)


def fused_forward(emb, addmask, labels3, params):
    B, S, H = emb.shape
    weights = [params[n] for n in WEIGHT_NAMES]
    return pl.pallas_call(
        fused_forward_kernel,
        out_shape=(jax.ShapeDtypeStruct((B, S, NUM_LABELS), jnp.float32),
                   jax.ShapeDtypeStruct((B, 3, 1), jnp.float32),
                   jax.ShapeDtypeStruct((B, 3, 1), jnp.float32)),
        grid=(B,),
        in_specs=[pl.BlockSpec((1, S, H), lambda b: (b, 0, 0)),
                  pl.BlockSpec((1, 1, S), lambda b: (b, 0, 0)),
                  pl.BlockSpec((1, 3, S), lambda b: (b, 0, 0))]
                 + [_full_spec(w) for w in weights],
        out_specs=(pl.BlockSpec((1, S, NUM_LABELS), lambda b: (b, 0, 0)),
                   pl.BlockSpec((1, 3, 1), lambda b: (b, 0, 0)),
                   pl.BlockSpec((1, 3, 1), lambda b: (b, 0, 0))),
        compiler_params=pltpu.CompilerParams(dimension_semantics=("parallel",)),
    )(emb, addmask, labels3, *weights)


# ---------------- parameters (deterministic, synthetic) ----------------

def init_params(key):
    keys = iter(jax.random.split(key, 32))

    def nrm(shape):
        return 0.02 * jax.random.normal(next(keys), shape, jnp.float32)

    inv_sqrt_d = 1.0 / math.sqrt(HEAD_DIM)
    p = {
        "word_emb": nrm((VOCAB, HIDDEN)),
        "pos_emb": nrm((MAX_POS, HIDDEN)),
        "type_emb": nrm((2, HIDDEN)),
        "emb_ln_g": jnp.ones((1, HIDDEN), jnp.float32),
        "emb_ln_b": jnp.zeros((1, HIDDEN), jnp.float32),
        "cls_w": nrm((HIDDEN, NUM_LABELS)).astype(jnp.bfloat16),
        "cls_b": jnp.zeros((1, NUM_LABELS), jnp.float32),
    }
    wqkv, wo, w1, w2 = [], [], [], []
    for _ in range(N_LAYERS):
        wq = nrm((HIDDEN, HIDDEN)) * inv_sqrt_d   # attention scale folded into Wq
        wk = nrm((HIDDEN, HIDDEN))
        wv = nrm((HIDDEN, HIDDEN))
        wqkv.append(jnp.concatenate([wq, wk, wv], axis=1))   # [H, 3H]
        wo.append(nrm((HIDDEN, HIDDEN)))
        w1.append(nrm((HIDDEN, INTER)))
        w2.append(nrm((INTER, HIDDEN)))
    # MXU weights in bf16; biases / LayerNorm params stay f32.
    p["wqkv"] = jnp.stack(wqkv).astype(jnp.bfloat16)                 # [L, H, 3H]
    # bqkv is zero here; a nonzero bq would carry the 1/sqrt(d) fold as well.
    p["bqkv"] = jnp.zeros((N_LAYERS, 1, 3 * HIDDEN), jnp.float32)
    p["wo"] = jnp.stack(wo).astype(jnp.bfloat16)                     # [L, H, H]
    p["bo"] = jnp.zeros((N_LAYERS, 1, HIDDEN), jnp.float32)
    p["ln1g"] = jnp.ones((N_LAYERS, 1, HIDDEN), jnp.float32)
    p["ln1b"] = jnp.zeros((N_LAYERS, 1, HIDDEN), jnp.float32)
    p["w1"] = jnp.stack(w1).astype(jnp.bfloat16)                     # [L, H, INTER]
    p["b1"] = jnp.zeros((N_LAYERS, 1, INTER), jnp.float32)
    p["w2"] = jnp.stack(w2).astype(jnp.bfloat16)                     # [L, INTER, H]
    p["b2"] = jnp.zeros((N_LAYERS, 1, HIDDEN), jnp.float32)
    p["ln2g"] = jnp.ones((N_LAYERS, 1, HIDDEN), jnp.float32)
    p["ln2b"] = jnp.zeros((N_LAYERS, 1, HIDDEN), jnp.float32)
    return p


# ---------------- forward (matches TripletExtractionModel.forward) ----------------

def triplet_extraction_forward(params, input_ids, attention_mask,
                               target_labels, opinion_labels, sentiment_labels):
    B, S = input_ids.shape
    # Embedding gathers stay in plain-JAX glue; LayerNorm happens in-kernel.
    emb = (params["word_emb"][input_ids]
           + params["pos_emb"][None, :S, :]
           + params["type_emb"][0][None, None, :]).astype(jnp.float32)

    addmask = ((1.0 - attention_mask.astype(jnp.float32)) * -1e9).reshape(B, 1, S)
    labels3 = jnp.stack([target_labels, opinion_labels, sentiment_labels],
                        axis=1).astype(jnp.int32)                        # [B, 3, S]

    logits, nll_sum, valid_cnt = fused_forward(emb, addmask, labels3, params)

    sums = nll_sum.sum(axis=(0, 2))                                      # [3]
    cnts = valid_cnt.sum(axis=(0, 2))                                    # [3]
    losses = sums / jnp.maximum(cnts, 1.0)                               # mean CE per label set
    loss = losses.sum()
    # The same BERT + head is applied to the same (input_ids, attention_mask)
    # three times, so the three logits tensors are identical (dropout is a
    # no-op in deterministic / eval mode).
    return loss, logits, logits, logits


if __name__ == "__main__":
    key = jax.random.PRNGKey(0)
    pkey, ikey, lk1, lk2, lk3 = jax.random.split(key, 5)
    params = init_params(pkey)

    B = 2
    input_ids = jax.random.randint(ikey, (B, SEQ), 0, VOCAB, dtype=jnp.int32)
    attention_mask = jnp.ones((B, SEQ), jnp.int32).at[1, SEQ - 2:].set(0)
    target_labels = jax.random.randint(lk1, (B, SEQ), 0, NUM_LABELS, dtype=jnp.int32)
    opinion_labels = jax.random.randint(lk2, (B, SEQ), 0, NUM_LABELS, dtype=jnp.int32)
    sentiment_labels = jax.random.randint(lk3, (B, SEQ), 0, NUM_LABELS, dtype=jnp.int32)

    fwd = jax.jit(triplet_extraction_forward)
    loss, lg_t, lg_o, lg_s = fwd(params, input_ids, attention_mask,
                                 target_labels, opinion_labels, sentiment_labels)
    jax.block_until_ready((loss, lg_t, lg_o, lg_s))
    print("KERNEL_OK")
</pallas_src>

<mosaic_0001>
module attributes {stable_mosaic.version = 11 : i64} {
  func.func @fused_forward_kernel(%arg0: i32, %arg1: memref<1x8x32xf32, #tpu.memory_space<vmem>>, %arg2: memref<1x1x8xf32, #tpu.memory_space<vmem>>, %arg3: memref<1x3x8xi32, #tpu.memory_space<vmem>>, %arg4: memref<1x32xf32, #tpu.memory_space<vmem>>, %arg5: memref<1x32xf32, #tpu.memory_space<vmem>>, %arg6: memref<2x32x96xbf16, #tpu.memory_space<vmem>>, %arg7: memref<2x1x96xf32, #tpu.memory_space<vmem>>, %arg8: memref<2x32x32xbf16, #tpu.memory_space<vmem>>, %arg9: memref<2x1x32xf32, #tpu.memory_space<vmem>>, %arg10: memref<2x1x32xf32, #tpu.memory_space<vmem>>, %arg11: memref<2x1x32xf32, #tpu.memory_space<vmem>>, %arg12: memref<2x32x64xbf16, #tpu.memory_space<vmem>>, %arg13: memref<2x1x64xf32, #tpu.memory_space<vmem>>, %arg14: memref<2x64x32xbf16, #tpu.memory_space<vmem>>, %arg15: memref<2x1x32xf32, #tpu.memory_space<vmem>>, %arg16: memref<2x1x32xf32, #tpu.memory_space<vmem>>, %arg17: memref<2x1x32xf32, #tpu.memory_space<vmem>>, %arg18: memref<32x4xbf16, #tpu.memory_space<vmem>>, %arg19: memref<1x4xf32, #tpu.memory_space<vmem>>, %arg20: memref<1x8x4xf32, #tpu.memory_space<vmem>>, %arg21: memref<1x3x1xf32, #tpu.memory_space<vmem>>, %arg22: memref<1x3x1xf32, #tpu.memory_space<vmem>>) attributes {dimension_semantics = [#tpu.dimension_semantics<parallel>], iteration_bounds = array<i64: 2>, scalar_prefetch = 0 : i64, scratch_operands = 0 : i64, tpu.core_type = #tpu.core_type<tc>, window_params = [{transform_indices = @transform_0, window_bounds = array<i64: 1, 8, 32>}, {transform_indices = @transform_1, window_bounds = array<i64: 1, 1, 8>}, {transform_indices = @transform_2, window_bounds = array<i64: 1, 3, 8>}, {pipeline_mode = #tpu.pipeline_mode<synchronous>, transform_indices = @transform_3, window_bounds = array<i64: 1, 32>}, {pipeline_mode = #tpu.pipeline_mode<synchronous>, transform_indices = @transform_4, window_bounds = array<i64: 1, 32>}, {pipeline_mode = #tpu.pipeline_mode<synchronous>, transform_indices = @transform_5, window_bounds = array<i64: 2, 32, 96>}, {pipeline_mode = #tpu.pipeline_mode<synchronous>, transform_indices = @transform_6, window_bounds = array<i64: 2, 1, 96>}, {pipeline_mode = #tpu.pipeline_mode<synchronous>, transform_indices = @transform_7, window_bounds = array<i64: 2, 32, 32>}, {pipeline_mode = #tpu.pipeline_mode<synchronous>, transform_indices = @transform_8, window_bounds = array<i64: 2, 1, 32>}, {pipeline_mode = #tpu.pipeline_mode<synchronous>, transform_indices = @transform_9, window_bounds = array<i64: 2, 1, 32>}, {pipeline_mode = #tpu.pipeline_mode<synchronous>, transform_indices = @transform_10, window_bounds = array<i64: 2, 1, 32>}, {pipeline_mode = #tpu.pipeline_mode<synchronous>, transform_indices = @transform_11, window_bounds = array<i64: 2, 32, 64>}, {pipeline_mode = #tpu.pipeline_mode<synchronous>, transform_indices = @transform_12, window_bounds = array<i64: 2, 1, 64>}, {pipeline_mode = #tpu.pipeline_mode<synchronous>, transform_indices = @transform_13, window_bounds = array<i64: 2, 64, 32>}, {pipeline_mode = #tpu.pipeline_mode<synchronous>, transform_indices = @transform_14, window_bounds = array<i64: 2, 1, 32>}, {pipeline_mode = #tpu.pipeline_mode<synchronous>, transform_indices = @transform_15, window_bounds = array<i64: 2, 1, 32>}, {pipeline_mode = #tpu.pipeline_mode<synchronous>, transform_indices = @transform_16, window_bounds = array<i64: 2, 1, 32>}, {pipeline_mode = #tpu.pipeline_mode<synchronous>, transform_indices = @transform_17, window_bounds = array<i64: 32, 4>}, {pipeline_mode = #tpu.pipeline_mode<synchronous>, transform_indices = @transform_18, window_bounds = array<i64: 1, 4>}, {transform_indices = @transform_19, window_bounds = array<i64: 1, 8, 4>}, {transform_indices = @transform_20, window_bounds = array<i64: 1, 3, 1>}, {transform_indices = @transform_21, window_bounds = array<i64: 1, 3, 1>}]} {
    %c0 = arith.constant 0 : index
    %c0_0 = arith.constant 0 : index
    %c0_1 = arith.constant 0 : index
    %0 = vector.load %arg1[%c0, %c0_0, %c0_1] : memref<1x8x32xf32, #tpu.memory_space<vmem>>, vector<1x8x32xf32>
    %1 = vector.shape_cast %0 : vector<1x8x32xf32> to vector<8x32xf32>
    %c0_2 = arith.constant 0 : index
    %c0_3 = arith.constant 0 : index
    %2 = vector.load %arg4[%c0_2, %c0_3] : memref<1x32xf32, #tpu.memory_space<vmem>>, vector<1x32xf32>
    %c0_4 = arith.constant 0 : index
    %c0_5 = arith.constant 0 : index
    %3 = vector.load %arg5[%c0_4, %c0_5] : memref<1x32xf32, #tpu.memory_space<vmem>>, vector<1x32xf32>
    %cst = arith.constant dense<0.000000e+00> : vector<8xf32>
    %4 = vector.multi_reduction <add>, %1, %cst [1] : vector<8x32xf32> to vector<8xf32>
    %5 = vector.shape_cast %4 : vector<8xf32> to vector<8x1xf32>
    %cst_6 = arith.constant 3.200000e+01 : f32
    %6 = vector.broadcast %cst_6 : f32 to vector<8x1xf32>
    %7 = arith.divf %5, %6 : vector<8x1xf32>
    %8 = vector.broadcast %7 : vector<8x1xf32> to vector<8x32xf32>
    %9 = arith.subf %1, %8 : vector<8x32xf32>
    %10 = arith.mulf %9, %9 : vector<8x32xf32>
    %cst_7 = arith.constant dense<0.000000e+00> : vector<8xf32>
    %11 = vector.multi_reduction <add>, %10, %cst_7 [1] : vector<8x32xf32> to vector<8xf32>
    %12 = vector.shape_cast %11 : vector<8xf32> to vector<8x1xf32>
    %cst_8 = arith.constant 3.200000e+01 : f32
    %13 = vector.broadcast %cst_8 : f32 to vector<8x1xf32>
    %14 = arith.divf %12, %13 : vector<8x1xf32>
    %15 = vector.broadcast %7 : vector<8x1xf32> to vector<8x32xf32>
    %16 = arith.subf %1, %15 : vector<8x32xf32>
    %cst_9 = arith.constant 9.99999996E-13 : f32
    %17 = vector.broadcast %cst_9 : f32 to vector<8x1xf32>
    %18 = arith.addf %14, %17 : vector<8x1xf32>
    %19 = math.rsqrt %18 : vector<8x1xf32>
    %20 = vector.broadcast %19 : vector<8x1xf32> to vector<8x32xf32>
    %21 = arith.mulf %16, %20 : vector<8x32xf32>
    %22 = vector.broadcast %2 : vector<1x32xf32> to vector<8x32xf32>
    %23 = arith.mulf %21, %22 : vector<8x32xf32>
    %24 = vector.broadcast %3 : vector<1x32xf32> to vector<8x32xf32>
    %25 = arith.addf %23, %24 : vector<8x32xf32>
    %c0_10 = arith.constant 0 : index
    %c0_11 = arith.constant 0 : index
    %c0_12 = arith.constant 0 : index
    %26 = vector.load %arg2[%c0_10, %c0_11, %c0_12] : memref<1x1x8xf32, #tpu.memory_space<vmem>>, vector<1x1x8xf32>
    %27 = vector.shape_cast %26 : vector<1x1x8xf32> to vector<1x8xf32>
    %c0_13 = arith.constant 0 : index
    %c0_14 = arith.constant 0 : index
    %c0_15 = arith.constant 0 : index
    %28 = vector.load %arg6[%c0_13, %c0_14, %c0_15] : memref<2x32x96xbf16, #tpu.memory_space<vmem>>, vector<1x32x96xbf16>
    %29 = vector.shape_cast %28 : vector<1x32x96xbf16> to vector<32x96xbf16>
    %30 = arith.truncf %25 : vector<8x32xf32> to vector<8x32xbf16>
    %cst_16 = arith.constant dense<0.000000e+00> : vector<8x96xf32>
    %31 = tpu.matmul %30, %29, %cst_16 {dimension_numbers = #tpu.dot_dimension_numbers<[1], [0], [0], [1], [0, 0, 1, 1], [], []>} : vector<8x32xbf16>, vector<32x96xbf16>, vector<8x96xf32> -> vector<8x96xf32>
    %c0_17 = arith.constant 0 : index
    %c0_18 = arith.constant 0 : index
    %c0_19 = arith.constant 0 : index
    %32 = vector.load %arg7[%c0_17, %c0_18, %c0_19] : memref<2x1x96xf32, #tpu.memory_space<vmem>>, vector<1x1x96xf32>
    %33 = vector.shape_cast %32 : vector<1x1x96xf32> to vector<1x96xf32>
    %34 = vector.broadcast %33 : vector<1x96xf32> to vector<8x96xf32>
    %35 = arith.addf %31, %34 : vector<8x96xf32>
    %36 = vector.extract_strided_slice %35 {offsets = [0, 0], sizes = [8, 32], strides = [1, 1]} : vector<8x96xf32> to vector<8x32xf32>
    %37 = vector.shape_cast %36 : vector<8x32xf32> to vector<8x4x8xf32>
    %38 = tpu.transpose %37, [1, 0, 2] : vector<8x4x8xf32> -> vector<4x8x8xf32>
    %39 = vector.extract_strided_slice %35 {offsets = [0, 32], sizes = [8, 32], strides = [1, 1]} : vector<8x96xf32> to vector<8x32xf32>
    %40 = vector.shape_cast %39 : vector<8x32xf32> to vector<8x4x8xf32>
    %41 = tpu.transpose %40, [1, 0, 2] : vector<8x4x8xf32> -> vector<4x8x8xf32>
    %42 = vector.extract_strided_slice %35 {offsets = [0, 64], sizes = [8, 32], strides = [1, 1]} : vector<8x96xf32> to vector<8x32xf32>
    %43 = vector.shape_cast %42 : vector<8x32xf32> to vector<8x4x8xf32>
    %44 = tpu.transpose %43, [1, 0, 2] : vector<8x4x8xf32> -> vector<4x8x8xf32>
    "tpu.trace_start"() <{level = 10 : i32, message = "hqd,hkd->hqk"}> : () -> ()
    %cst_20 = arith.constant dense<0.000000e+00> : vector<4x8x8xf32>
    %45 = tpu.matmul %38, %41, %cst_20 {dimension_numbers = #tpu.dot_dimension_numbers<[2], [2], [1], [1], [0, 0, 0, 1, 1, 1], [0], [0]>} : vector<4x8x8xf32>, vector<4x8x8xf32>, vector<4x8x8xf32> -> vector<4x8x8xf32>
    "tpu.trace_stop"() : () -> ()
    %46 = vector.shape_cast %27 : vector<1x8xf32> to vector<1x1x8xf32>
    %47 = vector.broadcast %46 : vector<1x1x8xf32> to vector<4x8x8xf32>
    %48 = arith.addf %45, %47 : vector<4x8x8xf32>
    %cst_21 = arith.constant dense<0xFF800000> : vector<4x8xf32>
    %49 = vector.multi_reduction <maximumf>, %48, %cst_21 [2] : vector<4x8x8xf32> to vector<4x8xf32>
    %50 = vector.shape_cast %49 : vector<4x8xf32> to vector<4x8x1xf32>
    %51 = vector.broadcast %50 : vector<4x8x1xf32> to vector<4x8x8xf32>
    %52 = arith.subf %48, %51 : vector<4x8x8xf32>
    %53 = math.exp %52 : vector<4x8x8xf32>
    %cst_22 = arith.constant dense<0.000000e+00> : vector<4x8xf32>
    %54 = vector.multi_reduction <add>, %53, %cst_22 [2] : vector<4x8x8xf32> to vector<4x8xf32>
    %55 = vector.shape_cast %54 : vector<4x8xf32> to vector<4x8x1xf32>
    %56 = tpu.reciprocal %55 {approx = true} : vector<4x8x1xf32> -> vector<4x8x1xf32>
    %57 = vector.broadcast %56 : vector<4x8x1xf32> to vector<4x8x8xf32>
    %58 = arith.mulf %53, %57 : vector<4x8x8xf32>
    "tpu.trace_start"() <{level = 10 : i32, message = "hqk,hkd->hqd"}> : () -> ()
    %cst_23 = arith.constant dense<0.000000e+00> : vector<4x8x8xf32>
    %59 = tpu.matmul %58, %44, %cst_23 {dimension_numbers = #tpu.dot_dimension_numbers<[2], [1], [1], [2], [0, 0, 0, 1, 1, 2], [0], [0]>} : vector<4x8x8xf32>, vector<4x8x8xf32>, vector<4x8x8xf32> -> vector<4x8x8xf32>
    "tpu.trace_stop"() : () -> ()
    %60 = tpu.transpose %59, [1, 0, 2] : vector<4x8x8xf32> -> vector<8x4x8xf32>
    %61 = vector.shape_cast %60 : vector<8x4x8xf32> to vector<8x32xf32>
    %c0_24 = arith.constant 0 : index
    %c0_25 = arith.constant 0 : index
    %c0_26 = arith.constant 0 : index
    %62 = vector.load %arg8[%c0_24, %c0_25, %c0_26] : memref<2x32x32xbf16, #tpu.memory_space<vmem>>, vector<1x32x32xbf16>
    %63 = vector.shape_cast %62 : vector<1x32x32xbf16> to vector<32x32xbf16>
    %64 = arith.truncf %61 : vector<8x32xf32> to vector<8x32xbf16>
    %cst_27 = arith.constant dense<0.000000e+00> : vector<8x32xf32>
    %65 = tpu.matmul %64, %63, %cst_27 {dimension_numbers = #tpu.dot_dimension_numbers<[1], [0], [0], [1], [0, 0, 1, 1], [], []>} : vector<8x32xbf16>, vector<32x32xbf16>, vector<8x32xf32> -> vector<8x32xf32>
    %c0_28 = arith.constant 0 : index
    %c0_29 = arith.constant 0 : index
    %c0_30 = arith.constant 0 : index
    %66 = vector.load %arg9[%c0_28, %c0_29, %c0_30] : memref<2x1x32xf32, #tpu.memory_space<vmem>>, vector<1x1x32xf32>
    %67 = vector.shape_cast %66 : vector<1x1x32xf32> to vector<1x32xf32>
    %68 = vector.broadcast %67 : vector<1x32xf32> to vector<8x32xf32>
    %69 = arith.addf %65, %68 : vector<8x32xf32>
    %70 = arith.addf %25, %69 : vector<8x32xf32>
    %c0_31 = arith.constant 0 : index
    %c0_32 = arith.constant 0 : index
    %c0_33 = arith.constant 0 : index
    %71 = vector.load %arg10[%c0_31, %c0_32, %c0_33] : memref<2x1x32xf32, #tpu.memory_space<vmem>>, vector<1x1x32xf32>
    %72 = vector.shape_cast %71 : vector<1x1x32xf32> to vector<1x32xf32>
    %c0_34 = arith.constant 0 : index
    %c0_35 = arith.constant 0 : index
    %c0_36 = arith.constant 0 : index
    %73 = vector.load %arg11[%c0_34, %c0_35, %c0_36] : memref<2x1x32xf32, #tpu.memory_space<vmem>>, vector<1x1x32xf32>
    %74 = vector.shape_cast %73 : vector<1x1x32xf32> to vector<1x32xf32>
    %cst_37 = arith.constant dense<0.000000e+00> : vector<8xf32>
    %75 = vector.multi_reduction <add>, %70, %cst_37 [1] : vector<8x32xf32> to vector<8xf32>
    %76 = vector.shape_cast %75 : vector<8xf32> to vector<8x1xf32>
    %cst_38 = arith.constant 3.200000e+01 : f32
    %77 = vector.broadcast %cst_38 : f32 to vector<8x1xf32>
    %78 = arith.divf %76, %77 : vector<8x1xf32>
    %79 = vector.broadcast %78 : vector<8x1xf32> to vector<8x32xf32>
    %80 = arith.subf %70, %79 : vector<8x32xf32>
    %81 = arith.mulf %80, %80 : vector<8x32xf32>
    %cst_39 = arith.constant dense<0.000000e+00> : vector<8xf32>
    %82 = vector.multi_reduction <add>, %81, %cst_39 [1] : vector<8x32xf32> to vector<8xf32>
    %83 = vector.shape_cast %82 : vector<8xf32> to vector<8x1xf32>
    %cst_40 = arith.constant 3.200000e+01 : f32
    %84 = vector.broadcast %cst_40 : f32 to vector<8x1xf32>
    %85 = arith.divf %83, %84 : vector<8x1xf32>
    %86 = vector.broadcast %78 : vector<8x1xf32> to vector<8x32xf32>
    %87 = arith.subf %70, %86 : vector<8x32xf32>
    %cst_41 = arith.constant 9.99999996E-13 : f32
    %88 = vector.broadcast %cst_41 : f32 to vector<8x1xf32>
    %89 = arith.addf %85, %88 : vector<8x1xf32>
    %90 = math.rsqrt %89 : vector<8x1xf32>
    %91 = vector.broadcast %90 : vector<8x1xf32> to vector<8x32xf32>
    %92 = arith.mulf %87, %91 : vector<8x32xf32>
    %93 = vector.broadcast %72 : vector<1x32xf32> to vector<8x32xf32>
    %94 = arith.mulf %92, %93 : vector<8x32xf32>
    %95 = vector.broadcast %74 : vector<1x32xf32> to vector<8x32xf32>
    %96 = arith.addf %94, %95 : vector<8x32xf32>
    %c0_42 = arith.constant 0 : index
    %c0_43 = arith.constant 0 : index
    %c0_44 = arith.constant 0 : index
    %97 = vector.load %arg12[%c0_42, %c0_43, %c0_44] : memref<2x32x64xbf16, #tpu.memory_space<vmem>>, vector<1x32x64xbf16>
    %98 = vector.shape_cast %97 : vector<1x32x64xbf16> to vector<32x64xbf16>
    %99 = arith.truncf %96 : vector<8x32xf32> to vector<8x32xbf16>
    %cst_45 = arith.constant dense<0.000000e+00> : vector<8x64xf32>
    %100 = tpu.matmul %99, %98, %cst_45 {dimension_numbers = #tpu.dot_dimension_numbers<[1], [0], [0], [1], [0, 0, 1, 1], [], []>} : vector<8x32xbf16>, vector<32x64xbf16>, vector<8x64xf32> -> vector<8x64xf32>
    %c0_46 = arith.constant 0 : index
    %c0_47 = arith.constant 0 : index
    %c0_48 = arith.constant 0 : index
    %101 = vector.load %arg13[%c0_46, %c0_47, %c0_48] : memref<2x1x64xf32, #tpu.memory_space<vmem>>, vector<1x1x64xf32>
    %102 = vector.shape_cast %101 : vector<1x1x64xf32> to vector<1x64xf32>
    %103 = vector.broadcast %102 : vector<1x64xf32> to vector<8x64xf32>
    %104 = arith.addf %100, %103 : vector<8x64xf32>
    %105 = arith.mulf %104, %104 : vector<8x64xf32>
    %106 = arith.mulf %104, %105 : vector<8x64xf32>
    %cst_49 = arith.constant 4.471500e-02 : f32
    %107 = vector.broadcast %cst_49 : f32 to vector<8x64xf32>
    %108 = arith.mulf %107, %106 : vector<8x64xf32>
    %109 = arith.addf %104, %108 : vector<8x64xf32>
    %cst_50 = arith.constant 0.797884583 : f32
    %110 = vector.broadcast %cst_50 : f32 to vector<8x64xf32>
    %111 = arith.mulf %110, %109 : vector<8x64xf32>
    %112 = math.tanh %111 : vector<8x64xf32>
    %cst_51 = arith.constant 1.000000e+00 : f32
    %113 = vector.broadcast %cst_51 : f32 to vector<8x64xf32>
    %114 = arith.addf %113, %112 : vector<8x64xf32>
    %cst_52 = arith.constant 5.000000e-01 : f32
    %115 = vector.broadcast %cst_52 : f32 to vector<8x64xf32>
    %116 = arith.mulf %115, %114 : vector<8x64xf32>
    %117 = arith.mulf %104, %116 : vector<8x64xf32>
    %c0_53 = arith.constant 0 : index
    %c0_54 = arith.constant 0 : index
    %c0_55 = arith.constant 0 : index
    %118 = vector.load %arg14[%c0_53, %c0_54, %c0_55] : memref<2x64x32xbf16, #tpu.memory_space<vmem>>, vector<1x64x32xbf16>
    %119 = vector.shape_cast %118 : vector<1x64x32xbf16> to vector<64x32xbf16>
    %120 = arith.truncf %117 : vector<8x64xf32> to vector<8x64xbf16>
    %cst_56 = arith.constant dense<0.000000e+00> : vector<8x32xf32>
    %121 = tpu.matmul %120, %119, %cst_56 {dimension_numbers = #tpu.dot_dimension_numbers<[1], [0], [0], [1], [0, 0, 1, 1], [], []>} : vector<8x64xbf16>, vector<64x32xbf16>, vector<8x32xf32> -> vector<8x32xf32>
    %c0_57 = arith.constant 0 : index
    %c0_58 = arith.constant 0 : index
    %c0_59 = arith.constant 0 : index
    %122 = vector.load %arg15[%c0_57, %c0_58, %c0_59] : memref<2x1x32xf32, #tpu.memory_space<vmem>>, vector<1x1x32xf32>
    %123 = vector.shape_cast %122 : vector<1x1x32xf32> to vector<1x32xf32>
    %124 = vector.broadcast %123 : vector<1x32xf32> to vector<8x32xf32>
    %125 = arith.addf %121, %124 : vector<8x32xf32>
    %126 = arith.addf %96, %125 : vector<8x32xf32>
    %c0_60 = arith.constant 0 : index
    %c0_61 = arith.constant 0 : index
    %c0_62 = arith.constant 0 : index
    %127 = vector.load %arg16[%c0_60, %c0_61, %c0_62] : memref<2x1x32xf32, #tpu.memory_space<vmem>>, vector<1x1x32xf32>
    %128 = vector.shape_cast %127 : vector<1x1x32xf32> to vector<1x32xf32>
    %c0_63 = arith.constant 0 : index
    %c0_64 = arith.constant 0 : index
    %c0_65 = arith.constant 0 : index
    %129 = vector.load %arg17[%c0_63, %c0_64, %c0_65] : memref<2x1x32xf32, #tpu.memory_space<vmem>>, vector<1x1x32xf32>
    %130 = vector.shape_cast %129 : vector<1x1x32xf32> to vector<1x32xf32>
    %cst_66 = arith.constant dense<0.000000e+00> : vector<8xf32>
    %131 = vector.multi_reduction <add>, %126, %cst_66 [1] : vector<8x32xf32> to vector<8xf32>
    %132 = vector.shape_cast %131 : vector<8xf32> to vector<8x1xf32>
    %cst_67 = arith.constant 3.200000e+01 : f32
    %133 = vector.broadcast %cst_67 : f32 to vector<8x1xf32>
    %134 = arith.divf %132, %133 : vector<8x1xf32>
    %135 = vector.broadcast %134 : vector<8x1xf32> to vector<8x32xf32>
    %136 = arith.subf %126, %135 : vector<8x32xf32>
    %137 = arith.mulf %136, %136 : vector<8x32xf32>
    %cst_68 = arith.constant dense<0.000000e+00> : vector<8xf32>
    %138 = vector.multi_reduction <add>, %137, %cst_68 [1] : vector<8x32xf32> to vector<8xf32>
    %139 = vector.shape_cast %138 : vector<8xf32> to vector<8x1xf32>
    %cst_69 = arith.constant 3.200000e+01 : f32
    %140 = vector.broadcast %cst_69 : f32 to vector<8x1xf32>
    %141 = arith.divf %139, %140 : vector<8x1xf32>
    %142 = vector.broadcast %134 : vector<8x1xf32> to vector<8x32xf32>
    %143 = arith.subf %126, %142 : vector<8x32xf32>
    %cst_70 = arith.constant 9.99999996E-13 : f32
    %144 = vector.broadcast %cst_70 : f32 to vector<8x1xf32>
    %145 = arith.addf %141, %144 : vector<8x1xf32>
    %146 = math.rsqrt %145 : vector<8x1xf32>
    %147 = vector.broadcast %146 : vector<8x1xf32> to vector<8x32xf32>
    %148 = arith.mulf %143, %147 : vector<8x32xf32>
    %149 = vector.broadcast %128 : vector<1x32xf32> to vector<8x32xf32>
    %150 = arith.mulf %148, %149 : vector<8x32xf32>
    %151 = vector.broadcast %130 : vector<1x32xf32> to vector<8x32xf32>
    %152 = arith.addf %150, %151 : vector<8x32xf32>
    %c1 = arith.constant 1 : index
    %c0_71 = arith.constant 0 : index
    %c0_72 = arith.constant 0 : index
    %153 = vector.load %arg6[%c1, %c0_71, %c0_72] : memref<2x32x96xbf16, #tpu.memory_space<vmem>>, vector<1x32x96xbf16>
    %154 = vector.shape_cast %153 : vector<1x32x96xbf16> to vector<32x96xbf16>
    %155 = arith.truncf %152 : vector<8x32xf32> to vector<8x32xbf16>
    %cst_73 = arith.constant dense<0.000000e+00> : vector<8x96xf32>
    %156 = tpu.matmul %155, %154, %cst_73 {dimension_numbers = #tpu.dot_dimension_numbers<[1], [0], [0], [1], [0, 0, 1, 1], [], []>} : vector<8x32xbf16>, vector<32x96xbf16>, vector<8x96xf32> -> vector<8x96xf32>
    %c1_74 = arith.constant 1 : index
    %c0_75 = arith.constant 0 : index
    %c0_76 = arith.constant 0 : index
    %157 = vector.load %arg7[%c1_74, %c0_75, %c0_76] : memref<2x1x96xf32, #tpu.memory_space<vmem>>, vector<1x1x96xf32>
    %158 = vector.shape_cast %157 : vector<1x1x96xf32> to vector<1x96xf32>
    %159 = vector.broadcast %158 : vector<1x96xf32> to vector<8x96xf32>
    %160 = arith.addf %156, %159 : vector<8x96xf32>
    %161 = vector.extract_strided_slice %160 {offsets = [0, 0], sizes = [8, 32], strides = [1, 1]} : vector<8x96xf32> to vector<8x32xf32>
    %162 = vector.shape_cast %161 : vector<8x32xf32> to vector<8x4x8xf32>
    %163 = tpu.transpose %162, [1, 0, 2] : vector<8x4x8xf32> -> vector<4x8x8xf32>
    %164 = vector.extract_strided_slice %160 {offsets = [0, 32], sizes = [8, 32], strides = [1, 1]} : vector<8x96xf32> to vector<8x32xf32>
    %165 = vector.shape_cast %164 : vector<8x32xf32> to vector<8x4x8xf32>
    %166 = tpu.transpose %165, [1, 0, 2] : vector<8x4x8xf32> -> vector<4x8x8xf32>
    %167 = vector.extract_strided_slice %160 {offsets = [0, 64], sizes = [8, 32], strides = [1, 1]} : vector<8x96xf32> to vector<8x32xf32>
    %168 = vector.shape_cast %167 : vector<8x32xf32> to vector<8x4x8xf32>
    %169 = tpu.transpose %168, [1, 0, 2] : vector<8x4x8xf32> -> vector<4x8x8xf32>
    "tpu.trace_start"() <{level = 10 : i32, message = "hqd,hkd->hqk"}> : () -> ()
    %cst_77 = arith.constant dense<0.000000e+00> : vector<4x8x8xf32>
    %170 = tpu.matmul %163, %166, %cst_77 {dimension_numbers = #tpu.dot_dimension_numbers<[2], [2], [1], [1], [0, 0, 0, 1, 1, 1], [0], [0]>} : vector<4x8x8xf32>, vector<4x8x8xf32>, vector<4x8x8xf32> -> vector<4x8x8xf32>
    "tpu.trace_stop"() : () -> ()
    %171 = vector.shape_cast %27 : vector<1x8xf32> to vector<1x1x8xf32>
    %172 = vector.broadcast %171 : vector<1x1x8xf32> to vector<4x8x8xf32>
    %173 = arith.addf %170, %172 : vector<4x8x8xf32>
    %cst_78 = arith.constant dense<0xFF800000> : vector<4x8xf32>
    %174 = vector.multi_reduction <maximumf>, %173, %cst_78 [2] : vector<4x8x8xf32> to vector<4x8xf32>
    %175 = vector.shape_cast %174 : vector<4x8xf32> to vector<4x8x1xf32>
    %176 = vector.broadcast %175 : vector<4x8x1xf32> to vector<4x8x8xf32>
    %177 = arith.subf %173, %176 : vector<4x8x8xf32>
    %178 = math.exp %177 : vector<4x8x8xf32>
    %cst_79 = arith.constant dense<0.000000e+00> : vector<4x8xf32>
    %179 = vector.multi_reduction <add>, %178, %cst_79 [2] : vector<4x8x8xf32> to vector<4x8xf32>
    %180 = vector.shape_cast %179 : vector<4x8xf32> to vector<4x8x1xf32>
    %181 = tpu.reciprocal %180 {approx = true} : vector<4x8x1xf32> -> vector<4x8x1xf32>
    %182 = vector.broadcast %181 : vector<4x8x1xf32> to vector<4x8x8xf32>
    %183 = arith.mulf %178, %182 : vector<4x8x8xf32>
    "tpu.trace_start"() <{level = 10 : i32, message = "hqk,hkd->hqd"}> : () -> ()
    %cst_80 = arith.constant dense<0.000000e+00> : vector<4x8x8xf32>
    %184 = tpu.matmul %183, %169, %cst_80 {dimension_numbers = #tpu.dot_dimension_numbers<[2], [1], [1], [2], [0, 0, 0, 1, 1, 2], [0], [0]>} : vector<4x8x8xf32>, vector<4x8x8xf32>, vector<4x8x8xf32> -> vector<4x8x8xf32>
    "tpu.trace_stop"() : () -> ()
    %185 = tpu.transpose %184, [1, 0, 2] : vector<4x8x8xf32> -> vector<8x4x8xf32>
    %186 = vector.shape_cast %185 : vector<8x4x8xf32> to vector<8x32xf32>
    %c1_81 = arith.constant 1 : index
    %c0_82 = arith.constant 0 : index
    %c0_83 = arith.constant 0 : index
    %187 = vector.load %arg8[%c1_81, %c0_82, %c0_83] : memref<2x32x32xbf16, #tpu.memory_space<vmem>>, vector<1x32x32xbf16>
    %188 = vector.shape_cast %187 : vector<1x32x32xbf16> to vector<32x32xbf16>
    %189 = arith.truncf %186 : vector<8x32xf32> to vector<8x32xbf16>
    %cst_84 = arith.constant dense<0.000000e+00> : vector<8x32xf32>
    %190 = tpu.matmul %189, %188, %cst_84 {dimension_numbers = #tpu.dot_dimension_numbers<[1], [0], [0], [1], [0, 0, 1, 1], [], []>} : vector<8x32xbf16>, vector<32x32xbf16>, vector<8x32xf32> -> vector<8x32xf32>
    %c1_85 = arith.constant 1 : index
    %c0_86 = arith.constant 0 : index
    %c0_87 = arith.constant 0 : index
    %191 = vector.load %arg9[%c1_85, %c0_86, %c0_87] : memref<2x1x32xf32, #tpu.memory_space<vmem>>, vector<1x1x32xf32>
    %192 = vector.shape_cast %191 : vector<1x1x32xf32> to vector<1x32xf32>
    %193 = vector.broadcast %192 : vector<1x32xf32> to vector<8x32xf32>
    %194 = arith.addf %190, %193 : vector<8x32xf32>
    %195 = arith.addf %152, %194 : vector<8x32xf32>
    %c1_88 = arith.constant 1 : index
    %c0_89 = arith.constant 0 : index
    %c0_90 = arith.constant 0 : index
    %196 = vector.load %arg10[%c1_88, %c0_89, %c0_90] : memref<2x1x32xf32, #tpu.memory_space<vmem>>, vector<1x1x32xf32>
    %197 = vector.shape_cast %196 : vector<1x1x32xf32> to vector<1x32xf32>
    %c1_91 = arith.constant 1 : index
    %c0_92 = arith.constant 0 : index
    %c0_93 = arith.constant 0 : index
    %198 = vector.load %arg11[%c1_91, %c0_92, %c0_93] : memref<2x1x32xf32, #tpu.memory_space<vmem>>, vector<1x1x32xf32>
    %199 = vector.shape_cast %198 : vector<1x1x32xf32> to vector<1x32xf32>
    %cst_94 = arith.constant dense<0.000000e+00> : vector<8xf32>
    %200 = vector.multi_reduction <add>, %195, %cst_94 [1] : vector<8x32xf32> to vector<8xf32>
    %201 = vector.shape_cast %200 : vector<8xf32> to vector<8x1xf32>
    %cst_95 = arith.constant 3.200000e+01 : f32
    %202 = vector.broadcast %cst_95 : f32 to vector<8x1xf32>
    %203 = arith.divf %201, %202 : vector<8x1xf32>
    %204 = vector.broadcast %203 : vector<8x1xf32> to vector<8x32xf32>
    %205 = arith.subf %195, %204 : vector<8x32xf32>
    %206 = arith.mulf %205, %205 : vector<8x32xf32>
    %cst_96 = arith.constant dense<0.000000e+00> : vector<8xf32>
    %207 = vector.multi_reduction <add>, %206, %cst_96 [1] : vector<8x32xf32> to vector<8xf32>
    %208 = vector.shape_cast %207 : vector<8xf32> to vector<8x1xf32>
    %cst_97 = arith.constant 3.200000e+01 : f32
    %209 = vector.broadcast %cst_97 : f32 to vector<8x1xf32>
    %210 = arith.divf %208, %209 : vector<8x1xf32>
    %211 = vector.broadcast %203 : vector<8x1xf32> to vector<8x32xf32>
    %212 = arith.subf %195, %211 : vector<8x32xf32>
    %cst_98 = arith.constant 9.99999996E-13 : f32
    %213 = vector.broadcast %cst_98 : f32 to vector<8x1xf32>
    %214 = arith.addf %210, %213 : vector<8x1xf32>
    %215 = math.rsqrt %214 : vector<8x1xf32>
    %216 = vector.broadcast %215 : vector<8x1xf32> to vector<8x32xf32>
    %217 = arith.mulf %212, %216 : vector<8x32xf32>
    %218 = vector.broadcast %197 : vector<1x32xf32> to vector<8x32xf32>
    %219 = arith.mulf %217, %218 : vector<8x32xf32>
    %220 = vector.broadcast %199 : vector<1x32xf32> to vector<8x32xf32>
    %221 = arith.addf %219, %220 : vector<8x32xf32>
    %c1_99 = arith.constant 1 : index
    %c0_100 = arith.constant 0 : index
    %c0_101 = arith.constant 0 : index
    %222 = vector.load %arg12[%c1_99, %c0_100, %c0_101] : memref<2x32x64xbf16, #tpu.memory_space<vmem>>, vector<1x32x64xbf16>
    %223 = vector.shape_cast %222 : vector<1x32x64xbf16> to vector<32x64xbf16>
    %224 = arith.truncf %221 : vector<8x32xf32> to vector<8x32xbf16>
    %cst_102 = arith.constant dense<0.000000e+00> : vector<8x64xf32>
    %225 = tpu.matmul %224, %223, %cst_102 {dimension_numbers = #tpu.dot_dimension_numbers<[1], [0], [0], [1], [0, 0, 1, 1], [], []>} : vector<8x32xbf16>, vector<32x64xbf16>, vector<8x64xf32> -> vector<8x64xf32>
    %c1_103 = arith.constant 1 : index
    %c0_104 = arith.constant 0 : index
    %c0_105 = arith.constant 0 : index
    %226 = vector.load %arg13[%c1_103, %c0_104, %c0_105] : memref<2x1x64xf32, #tpu.memory_space<vmem>>, vector<1x1x64xf32>
    %227 = vector.shape_cast %226 : vector<1x1x64xf32> to vector<1x64xf32>
    %228 = vector.broadcast %227 : vector<1x64xf32> to vector<8x64xf32>
    %229 = arith.addf %225, %228 : vector<8x64xf32>
    %230 = arith.mulf %229, %229 : vector<8x64xf32>
    %231 = arith.mulf %229, %230 : vector<8x64xf32>
    %cst_106 = arith.constant 4.471500e-02 : f32
    %232 = vector.broadcast %cst_106 : f32 to vector<8x64xf32>
    %233 = arith.mulf %232, %231 : vector<8x64xf32>
    %234 = arith.addf %229, %233 : vector<8x64xf32>
    %cst_107 = arith.constant 0.797884583 : f32
    %235 = vector.broadcast %cst_107 : f32 to vector<8x64xf32>
    %236 = arith.mulf %235, %234 : vector<8x64xf32>
    %237 = math.tanh %236 : vector<8x64xf32>
    %cst_108 = arith.constant 1.000000e+00 : f32
    %238 = vector.broadcast %cst_108 : f32 to vector<8x64xf32>
    %239 = arith.addf %238, %237 : vector<8x64xf32>
    %cst_109 = arith.constant 5.000000e-01 : f32
    %240 = vector.broadcast %cst_109 : f32 to vector<8x64xf32>
    %241 = arith.mulf %240, %239 : vector<8x64xf32>
    %242 = arith.mulf %229, %241 : vector<8x64xf32>
    %c1_110 = arith.constant 1 : index
    %c0_111 = arith.constant 0 : index
    %c0_112 = arith.constant 0 : index
    %243 = vector.load %arg14[%c1_110, %c0_111, %c0_112] : memref<2x64x32xbf16, #tpu.memory_space<vmem>>, vector<1x64x32xbf16>
    %244 = vector.shape_cast %243 : vector<1x64x32xbf16> to vector<64x32xbf16>
    %245 = arith.truncf %242 : vector<8x64xf32> to vector<8x64xbf16>
    %cst_113 = arith.constant dense<0.000000e+00> : vector<8x32xf32>
    %246 = tpu.matmul %245, %244, %cst_113 {dimension_numbers = #tpu.dot_dimension_numbers<[1], [0], [0], [1], [0, 0, 1, 1], [], []>} : vector<8x64xbf16>, vector<64x32xbf16>, vector<8x32xf32> -> vector<8x32xf32>
    %c1_114 = arith.constant 1 : index
    %c0_115 = arith.constant 0 : index
    %c0_116 = arith.constant 0 : index
    %247 = vector.load %arg15[%c1_114, %c0_115, %c0_116] : memref<2x1x32xf32, #tpu.memory_space<vmem>>, vector<1x1x32xf32>
    %248 = vector.shape_cast %247 : vector<1x1x32xf32> to vector<1x32xf32>
    %249 = vector.broadcast %248 : vector<1x32xf32> to vector<8x32xf32>
    %250 = arith.addf %246, %249 : vector<8x32xf32>
    %251 = arith.addf %221, %250 : vector<8x32xf32>
    %c1_117 = arith.constant 1 : index
    %c0_118 = arith.constant 0 : index
    %c0_119 = arith.constant 0 : index
    %252 = vector.load %arg16[%c1_117, %c0_118, %c0_119] : memref<2x1x32xf32, #tpu.memory_space<vmem>>, vector<1x1x32xf32>
    %253 = vector.shape_cast %252 : vector<1x1x32xf32> to vector<1x32xf32>
    %c1_120 = arith.constant 1 : index
    %c0_121 = arith.constant 0 : index
    %c0_122 = arith.constant 0 : index
    %254 = vector.load %arg17[%c1_120, %c0_121, %c0_122] : memref<2x1x32xf32, #tpu.memory_space<vmem>>, vector<1x1x32xf32>
    %255 = vector.shape_cast %254 : vector<1x1x32xf32> to vector<1x32xf32>
    %cst_123 = arith.constant dense<0.000000e+00> : vector<8xf32>
    %256 = vector.multi_reduction <add>, %251, %cst_123 [1] : vector<8x32xf32> to vector<8xf32>
    %257 = vector.shape_cast %256 : vector<8xf32> to vector<8x1xf32>
    %cst_124 = arith.constant 3.200000e+01 : f32
    %258 = vector.broadcast %cst_124 : f32 to vector<8x1xf32>
    %259 = arith.divf %257, %258 : vector<8x1xf32>
    %260 = vector.broadcast %259 : vector<8x1xf32> to vector<8x32xf32>
    %261 = arith.subf %251, %260 : vector<8x32xf32>
    %262 = arith.mulf %261, %261 : vector<8x32xf32>
    %cst_125 = arith.constant dense<0.000000e+00> : vector<8xf32>
    %263 = vector.multi_reduction <add>, %262, %cst_125 [1] : vector<8x32xf32> to vector<8xf32>
    %264 = vector.shape_cast %263 : vector<8xf32> to vector<8x1xf32>
    %cst_126 = arith.constant 3.200000e+01 : f32
    %265 = vector.broadcast %cst_126 : f32 to vector<8x1xf32>
    %266 = arith.divf %264, %265 : vector<8x1xf32>
    %267 = vector.broadcast %259 : vector<8x1xf32> to vector<8x32xf32>
    %268 = arith.subf %251, %267 : vector<8x32xf32>
    %cst_127 = arith.constant 9.99999996E-13 : f32
    %269 = vector.broadcast %cst_127 : f32 to vector<8x1xf32>
    %270 = arith.addf %266, %269 : vector<8x1xf32>
    %271 = math.rsqrt %270 : vector<8x1xf32>
    %272 = vector.broadcast %271 : vector<8x1xf32> to vector<8x32xf32>
    %273 = arith.mulf %268, %272 : vector<8x32xf32>
    %274 = vector.broadcast %253 : vector<1x32xf32> to vector<8x32xf32>
    %275 = arith.mulf %273, %274 : vector<8x32xf32>
    %276 = vector.broadcast %255 : vector<1x32xf32> to vector<8x32xf32>
    %277 = arith.addf %275, %276 : vector<8x32xf32>
    %c0_128 = arith.constant 0 : index
    %c0_129 = arith.constant 0 : index
    %278 = vector.load %arg18[%c0_128, %c0_129] : memref<32x4xbf16, #tpu.memory_space<vmem>>, vector<32x4xbf16>
    %279 = arith.truncf %277 : vector<8x32xf32> to vector<8x32xbf16>
    %cst_130 = arith.constant dense<0.000000e+00> : vector<8x4xf32>
    %280 = tpu.matmul %279, %278, %cst_130 {dimension_numbers = #tpu.dot_dimension_numbers<[1], [0], [0], [1], [0, 0, 1, 1], [], []>} : vector<8x32xbf16>, vector<32x4xbf16>, vector<8x4xf32> -> vector<8x4xf32>
    %c0_131 = arith.constant 0 : index
    %c0_132 = arith.constant 0 : index
    %281 = vector.load %arg19[%c0_131, %c0_132] : memref<1x4xf32, #tpu.memory_space<vmem>>, vector<1x4xf32>
    %282 = vector.broadcast %281 : vector<1x4xf32> to vector<8x4xf32>
    %283 = arith.addf %280, %282 : vector<8x4xf32>
    %c0_133 = arith.constant 0 : index
    %c0_134 = arith.constant 0 : index
    %c0_135 = arith.constant 0 : index
    %284 = vector.load %arg20[%c0_133, %c0_134, %c0_135] : memref<1x8x4xf32, #tpu.memory_space<vmem>>, vector<1x8x4xf32>
    %285 = vector.shape_cast %284 : vector<1x8x4xf32> to vector<8x4xf32>
    %286 = vector.shape_cast %283 : vector<8x4xf32> to vector<1x8x4xf32>
    tpu.vector_store %arg20[%c0_133, %c0_134, %c0_135], %286 {strides = array<i32>} : memref<1x8x4xf32, #tpu.memory_space<vmem>>, vector<1x8x4xf32>,
    %cst_136 = arith.constant dense<0xFF800000> : vector<8xf32>
    %287 = vector.multi_reduction <maximumf>, %283, %cst_136 [1] : vector<8x4xf32> to vector<8xf32>
    %288 = vector.shape_cast %287 : vector<8xf32> to vector<8x1xf32>
    %289 = vector.broadcast %288 : vector<8x1xf32> to vector<8x4xf32>
    %290 = arith.subf %283, %289 : vector<8x4xf32>
    %291 = math.exp %290 : vector<8x4xf32>
    %cst_137 = arith.constant dense<0.000000e+00> : vector<8xf32>
    %292 = vector.multi_reduction <add>, %291, %cst_137 [1] : vector<8x4xf32> to vector<8xf32>
    %293 = vector.shape_cast %292 : vector<8xf32> to vector<8x1xf32>
    %294 = math.log %293 : vector<8x1xf32>
    %295 = arith.addf %294, %288 : vector<8x1xf32>
    %296 = vector.broadcast %295 : vector<8x1xf32> to vector<8x4xf32>
    %297 = arith.subf %283, %296 : vector<8x4xf32>
    %c0_138 = arith.constant 0 : index
    %c0_139 = arith.constant 0 : index
    %c0_140 = arith.constant 0 : index
    %298 = vector.load %arg3[%c0_138, %c0_139, %c0_140] : memref<1x3x8xi32, #tpu.memory_space<vmem>>, vector<1x3x8xi32>
    %299 = vector.shape_cast %298 : vector<1x3x8xi32> to vector<3x8xi32>
    %c0_i32 = arith.constant 0 : i32
    %300 = vector.broadcast %c0_i32 : i32 to vector<3x8xi32>
    %301 = arith.cmpi sge, %299, %300 : vector<3x8xi32>
    %c0_i32_141 = arith.constant 0 : i32
    %302 = vector.broadcast %c0_i32_141 : i32 to vector<3x8xi32>
    %303 = arith.select %301, %299, %302 : vector<3x8xi1>, vector<3x8xi32>
    %304 = tpu.iota {dimensions = array<i32: 2>} : vector<3x8x4xi32>
    %305 = vector.shape_cast %303 : vector<3x8xi32> to vector<3x8x1xi32>
    %306 = vector.broadcast %305 : vector<3x8x1xi32> to vector<3x8x4xi32>
    %307 = arith.cmpi eq, %304, %306 : vector<3x8x4xi32>
    %308 = vector.shape_cast %297 : vector<8x4xf32> to vector<1x8x4xf32>
    %cst_142 = arith.constant 0.000000e+00 : f32
    %309 = vector.shape_cast %308 : vector<1x8x4xf32> to vector<1x8x4xf32>
    %310 = vector.broadcast %309 : vector<1x8x4xf32> to vector<3x8x4xf32>
    %311 = vector.broadcast %cst_142 : f32 to vector<3x8x4xf32>
    %312 = arith.select %307, %310, %311 : vector<3x8x4xi1>, vector<3x8x4xf32>
    %cst_143 = arith.constant dense<0.000000e+00> : vector<3x8xf32>
    %313 = vector.multi_reduction <add>, %312, %cst_143 [2] : vector<3x8x4xf32> to vector<3x8xf32>
    %cst_144 = arith.constant 0.000000e+00 : f32
    %314 = vector.broadcast %cst_144 : f32 to vector<3x8xf32>
    %315 = arith.subf %314, %313 : vector<3x8xf32>
    %cst_145 = arith.constant 0.000000e+00 : f32
    %316 = vector.broadcast %cst_145 : f32 to vector<3x8xf32>
    %317 = arith.select %301, %315, %316 : vector<3x8xi1>, vector<3x8xf32>
    %cst_146 = arith.constant dense<0.000000e+00> : vector<3xf32>
    %318 = vector.multi_reduction <add>, %317, %cst_146 [1] : vector<3x8xf32> to vector<3xf32>
    %319 = vector.shape_cast %318 : vector<3xf32> to vector<3x1xf32>
    %c0_147 = arith.constant 0 : index
    %c0_148 = arith.constant 0 : index
    %c0_149 = arith.constant 0 : index
    %320 = vector.load %arg21[%c0_147, %c0_148, %c0_149] : memref<1x3x1xf32, #tpu.memory_space<vmem>>, vector<1x3x1xf32>
    %321 = vector.shape_cast %320 : vector<1x3x1xf32> to vector<3x1xf32>
    %322 = vector.shape_cast %319 : vector<3x1xf32> to vector<1x3x1xf32>
    tpu.vector_store %arg21[%c0_147, %c0_148, %c0_149], %322 {strides = array<i32>} : memref<1x3x1xf32, #tpu.memory_space<vmem>>, vector<1x3x1xf32>,
    %323 = arith.extui %301 : vector<3x8xi1> to vector<3x8xi32>
    %324 = arith.sitofp %323 : vector<3x8xi32> to vector<3x8xf32>
    %cst_150 = arith.constant dense<0.000000e+00> : vector<3xf32>
    %325 = vector.multi_reduction <add>, %324, %cst_150 [1] : vector<3x8xf32> to vector<3xf32>
    %326 = vector.shape_cast %325 : vector<3xf32> to vector<3x1xf32>
    %c0_151 = arith.constant 0 : index
    %c0_152 = arith.constant 0 : index
    %c0_153 = arith.constant 0 : index
    %327 = vector.load %arg22[%c0_151, %c0_152, %c0_153] : memref<1x3x1xf32, #tpu.memory_space<vmem>>, vector<1x3x1xf32>
    %328 = vector.shape_cast %327 : vector<1x3x1xf32> to vector<3x1xf32>
    %329 = vector.shape_cast %326 : vector<3x1xf32> to vector<1x3x1xf32>
    tpu.vector_store %arg22[%c0_151, %c0_152, %c0_153], %329 {strides = array<i32>} : memref<1x3x1xf32, #tpu.memory_space<vmem>>, vector<1x3x1xf32>,
    return
  }
  func.func @transform_0(%arg0: i32) -> (i32, i32, i32) {
    %c0_i32 = arith.constant 0 : i32
    %c0_i32_0 = arith.constant 0 : i32
    %c0_i32_1 = arith.constant 0 : i32
    return %arg0, %c0_i32, %c0_i32_0 : i32, i32, i32
  }
  func.func @transform_1(%arg0: i32) -> (i32, i32, i32) {
    %c0_i32 = arith.constant 0 : i32
    %c0_i32_0 = arith.constant 0 : i32
    %c0_i32_1 = arith.constant 0 : i32
    return %arg0, %c0_i32, %c0_i32_0 : i32, i32, i32
  }
  func.func @transform_2(%arg0: i32) -> (i32, i32, i32) {
    %c0_i32 = arith.constant 0 : i32
    %c0_i32_0 = arith.constant 0 : i32
    %c0_i32_1 = arith.constant 0 : i32
    return %arg0, %c0_i32, %c0_i32_0 : i32, i32, i32
  }
  func.func @transform_3(%arg0: i32) -> (i32, i32) {
    %c0_i32 = arith.constant 0 : i32
    %c0_i32_0 = arith.constant 0 : i32
    %c0_i32_1 = arith.constant 0 : i32
    return %c0_i32, %c0_i32_0 : i32, i32
  }
  func.func @transform_4(%arg0: i32) -> (i32, i32) {
    %c0_i32 = arith.constant 0 : i32
    %c0_i32_0 = arith.constant 0 : i32
    %c0_i32_1 = arith.constant 0 : i32
    return %c0_i32, %c0_i32_0 : i32, i32
  }
  func.func @transform_5(%arg0: i32) -> (i32, i32, i32) {
    %c0_i32 = arith.constant 0 : i32
    %c0_i32_0 = arith.constant 0 : i32
    %c0_i32_1 = arith.constant 0 : i32
    %c0_i32_2 = arith.constant 0 : i32
    return %c0_i32, %c0_i32_0, %c0_i32_1 : i32, i32, i32
  }
  func.func @transform_6(%arg0: i32) -> (i32, i32, i32) {
    %c0_i32 = arith.constant 0 : i32
    %c0_i32_0 = arith.constant 0 : i32
    %c0_i32_1 = arith.constant 0 : i32
    %c0_i32_2 = arith.constant 0 : i32
    return %c0_i32, %c0_i32_0, %c0_i32_1 : i32, i32, i32
  }
  func.func @transform_7(%arg0: i32) -> (i32, i32, i32) {
    %c0_i32 = arith.constant 0 : i32
    %c0_i32_0 = arith.constant 0 : i32
    %c0_i32_1 = arith.constant 0 : i32
    %c0_i32_2 = arith.constant 0 : i32
    return %c0_i32, %c0_i32_0, %c0_i32_1 : i32, i32, i32
  }
  func.func @transform_8(%arg0: i32) -> (i32, i32, i32) {
    %c0_i32 = arith.constant 0 : i32
    %c0_i32_0 = arith.constant 0 : i32
    %c0_i32_1 = arith.constant 0 : i32
    %c0_i32_2 = arith.constant 0 : i32
    return %c0_i32, %c0_i32_0, %c0_i32_1 : i32, i32, i32
  }
  func.func @transform_9(%arg0: i32) -> (i32, i32, i32) {
    %c0_i32 = arith.constant 0 : i32
    %c0_i32_0 = arith.constant 0 : i32
    %c0_i32_1 = arith.constant 0 : i32
    %c0_i32_2 = arith.constant 0 : i32
    return %c0_i32, %c0_i32_0, %c0_i32_1 : i32, i32, i32
  }
  func.func @transform_10(%arg0: i32) -> (i32, i32, i32) {
    %c0_i32 = arith.constant 0 : i32
    %c0_i32_0 = arith.constant 0 : i32
    %c0_i32_1 = arith.constant 0 : i32
    %c0_i32_2 = arith.constant 0 : i32
    return %c0_i32, %c0_i32_0, %c0_i32_1 : i32, i32, i32
  }
  func.func @transform_11(%arg0: i32) -> (i32, i32, i32) {
    %c0_i32 = arith.constant 0 : i32
    %c0_i32_0 = arith.constant 0 : i32
    %c0_i32_1 = arith.constant 0 : i32
    %c0_i32_2 = arith.constant 0 : i32
    return %c0_i32, %c0_i32_0, %c0_i32_1 : i32, i32, i32
  }
  func.func @transform_12(%arg0: i32) -> (i32, i32, i32) {
    %c0_i32 = arith.constant 0 : i32
    %c0_i32_0 = arith.constant 0 : i32
    %c0_i32_1 = arith.constant 0 : i32
    %c0_i32_2 = arith.constant 0 : i32
    return %c0_i32, %c0_i32_0, %c0_i32_1 : i32, i32, i32
  }
  func.func @transform_13(%arg0: i32) -> (i32, i32, i32) {
    %c0_i32 = arith.constant 0 : i32
    %c0_i32_0 = arith.constant 0 : i32
    %c0_i32_1 = arith.constant 0 : i32
    %c0_i32_2 = arith.constant 0 : i32
    return %c0_i32, %c0_i32_0, %c0_i32_1 : i32, i32, i32
  }
  func.func @transform_14(%arg0: i32) -> (i32, i32, i32) {
    %c0_i32 = arith.constant 0 : i32
    %c0_i32_0 = arith.constant 0 : i32
    %c0_i32_1 = arith.constant 0 : i32
    %c0_i32_2 = arith.constant 0 : i32
    return %c0_i32, %c0_i32_0, %c0_i32_1 : i32, i32, i32
  }
  func.func @transform_15(%arg0: i32) -> (i32, i32, i32) {
    %c0_i32 = arith.constant 0 : i32
    %c0_i32_0 = arith.constant 0 : i32
    %c0_i32_1 = arith.constant 0 : i32
    %c0_i32_2 = arith.constant 0 : i32
    return %c0_i32, %c0_i32_0, %c0_i32_1 : i32, i32, i32
  }
  func.func @transform_16(%arg0: i32) -> (i32, i32, i32) {
    %c0_i32 = arith.constant 0 : i32
    %c0_i32_0 = arith.constant 0 : i32
    %c0_i32_1 = arith.constant 0 : i32
    %c0_i32_2 = arith.constant 0 : i32
    return %c0_i32, %c0_i32_0, %c0_i32_1 : i32, i32, i32
  }
  func.func @transform_17(%arg0: i32) -> (i32, i32) {
    %c0_i32 = arith.constant 0 : i32
    %c0_i32_0 = arith.constant 0 : i32
    %c0_i32_1 = arith.constant 0 : i32
    return %c0_i32, %c0_i32_0 : i32, i32
  }
  func.func @transform_18(%arg0: i32) -> (i32, i32) {
    %c0_i32 = arith.constant 0 : i32
    %c0_i32_0 = arith.constant 0 : i32
    %c0_i32_1 = arith.constant 0 : i32
    return %c0_i32, %c0_i32_0 : i32, i32
  }
  func.func @transform_19(%arg0: i32) -> (i32, i32, i32) {
    %c0_i32 = arith.constant 0 : i32
    %c0_i32_0 = arith.constant 0 : i32
    %c0_i32_1 = arith.constant 0 : i32
    return %arg0, %c0_i32, %c0_i32_0 : i32, i32, i32
  }
  func.func @transform_20(%arg0: i32) -> (i32, i32, i32) {
    %c0_i32 = arith.constant 0 : i32
    %c0_i32_0 = arith.constant 0 : i32
    %c0_i32_1 = arith.constant 0 : i32
    return %arg0, %c0_i32, %c0_i32_0 : i32, i32, i32
  }
  func.func @transform_21(%arg0: i32) -> (i32, i32, i32) {
    %c0_i32 = arith.constant 0 : i32
    %c0_i32_0 = arith.constant 0 : i32
    %c0_i32_1 = arith.constant 0 : i32
    return %arg0, %c0_i32, %c0_i32_0 : i32, i32, i32
  }
}

</mosaic_0001>

<bundles_post_ra>
// kernel: triplet_extraction_forward.1
= control target key start
LH: loop header
LB: loop body
LE: loop exit
PB: predicated region body
PF: predicated region fallthrough
CT: control target
= control target key end

     0   :  { %s4113_s0 = inlined_call_operand.vmem [shape: f32[2,8,32], index: 0, kind: input, shape index: {}]   ;;  %s4114_s1 = inlined_call_operand.vmem [shape: f32[2,1,8], index: 1, kind: input, shape index: {}]   ;;  %s4115_s2 = inlined_call_operand.vmem [shape: s32[2,3,8], index: 2, kind: input, shape index: {}]   ;;  %s4116_s3 = inlined_call_operand.vmem [shape: f32[1,32], index: 3, kind: input, shape index: {}]   ;;  %s4117_s4 = inlined_call_operand.vmem [shape: f32[1,32], index: 4, kind: input, shape index: {}]   ;;  %s4118_s5 = inlined_call_operand.vmem [shape: bf16[2,32,96], index: 5, kind: input, shape index: {}]   ;;  %s4119_s6 = inlined_call_operand.vmem [shape: f32[2,1,96], index: 6, kind: input, shape index: {}]   ;;  %s4120_s7 = inlined_call_operand.vmem [shape: bf16[2,32,32], index: 7, kind: input, shape index: {}]   ;;  %s4121_s8 = inlined_call_operand.vmem [shape: f32[2,1,32], index: 8, kind: input, shape index: {}]   ;;  %s4122_s9 = inlined_call_operand.vmem [shape: f32[2,1,32], index: 9, kind: input, shape index: {}]   ;;  %s4123_s10 = inlined_call_operand.vmem [shape: f32[2,1,32], index: 10, kind: input, shape index: {}]   ;;  %s4124_s11 = inlined_call_operand.vmem [shape: bf16[2,32,64], index: 11, kind: input, shape index: {}]   ;;  %s4125_s12 = inlined_call_operand.vmem [shape: f32[2,1,64], index: 12, kind: input, shape index: {}]   ;;  %s4126_s13 = inlined_call_operand.vmem [shape: bf16[2,64,32], index: 13, kind: input, shape index: {}]   ;;  %s4127_s14 = inlined_call_operand.vmem [shape: f32[2,1,32], index: 14, kind: input, shape index: {}]   ;;  %s4128_s15 = inlined_call_operand.vmem [shape: f32[2,1,32], index: 15, kind: input, shape index: {}]   ;;  %s4129_s16 = inlined_call_operand.vmem [shape: f32[2,1,32], index: 16, kind: input, shape index: {}]   ;;  %s4130_s17 = inlined_call_operand.vmem [shape: bf16[32,4], index: 17, kind: input, shape index: {}]   ;;  %s4131_s18 = inlined_call_operand.vmem [shape: f32[1,4], index: 18, kind: input, shape index: {}]   ;;  %s4132_s19 = inlined_call_operand.vmem [shape: f32[2,8,4], index: 19, kind: output, shape index: {0}]   ;;  %s4133_s20 = inlined_call_operand.vmem [shape: f32[2,3,1], index: 20, kind: output, shape index: {1}]   ;;  %s4134_s21 = inlined_call_operand.vmem [shape: f32[2,3,1], index: 21, kind: output, shape index: {2}]  }
   0x1   :  { %4147 = sst [smem:[#allocation2_spill]] %s4113_s0 }
   0x2   :  { %4148 = sst [smem:[#allocation3_spill]] %s4114_s1 }
   0x3   :  { %4149 = sst [smem:[#allocation4_spill]] %s4115_s2  ;;  %s3388_s2 = smov 0  }
   0x4   :  { %4150 = sst [smem:[#allocation5_spill]] %s4116_s3 }
   0x5   :  { %4151 = sst [smem:[#allocation6_spill]] %s4117_s4 }
   0x6   :  { %4152 = sst [smem:[#allocation7_spill]] %s4118_s5 }
   0x7 LB: > { %s2959_s25 = sadd.s32 4294967295, %s3264_s2   ;;  %p2963_p0 = scmp.ge.s32.totalorder %s3264_s2, 1  ;;  %s3264_s2 = sphi %s3388_s2, %s32_s2  }
   0x8   : > { %p608_p1 = scmp.lt.s32.totalorder %s3264_s2, 3 }
   0xa   : > { %p609_p2 = pnand %p2963_p0, %p608_p1 }
   0xb   : > { %p681_p3 = scmp.lt.s32.totalorder (!%p609_p2), %s2959_s25, 1  ;;  %s4153_s28 = sld [smem:[#allocation3_spill]] (!%p609_p2) }
   0xc   : > { %612 = sbr.rel (%p609_p2) target bundleno = 4987 (0x137b), region = 96  ;;  %s4154_s30 = sld [smem:[#allocation2_spill]] (!%p609_p2) }
   0xd   : > { %s4155_s1 = sld [smem:[#allocation7_spill]] (!%p609_p2)  ;;  %s3267_s27 = smov (!%p609_p2), 104  }
   0xe   : > { %s4156_s4 = sld [smem:[#allocation5_spill]] (!%p609_p2)  ;;  %s4145_s3 = smov (!%p609_p2), 120  }
   0xf   : > { %s4157_s22 = sld [smem:[#allocation6_spill]] (!%p609_p2)  ;;  %s4143_s0 = smov (!%p609_p2), 96  }
  0x10   : > { %s4140_s23 = smov (!%p609_p2), 8   ;;  %s4139_s24 = smov (!%p609_p2), 24  }
  0x11   : > { %s4168_s25 = smov (!%p681_p3, %s2959_s25), 1  ;;  %vm708_vm0 = vcmask 261120   ;;  %v3266_v2 = vmov 32.0   ;;  %v3189_v32 = vld [vmem:[%s4119_s6] ss:$0 sm:$0xff]  ;;  %vm795_vm5 = vcmask 1047556  }
  0x12   : > { %s4137_s26 = sshll.u32 %s4168_s25, 3  ;;  %s687_s29 = scalar_lea.vmem %s4153_s28, %s4168_s25  ;;  %3206 = vrcp.f32 %v3266_v2  ;;  %v3271_v38 = vmov 1983009808   ;;  %v3272_v45 = vmov 1934713408   ;;  %vm1152_vm6 = vcmask 64512  }
  0x13   : > { %s684_s5 = scalar_lea.vmem %s4154_s30, %s4137_s26  ;;  %v3122_v14 = vld [vmem:[%s4155_s1 + $0x8] sm:$0xff]  ;;  %v3121_v15 = vld [vmem:[%s4155_s1] sm:$0xff]  ;;  %v800_v39 = vunpack.c.l.s4 %v3271_v38  ;;  %v824_v46 = vunpack.c.l.s4 %v3272_v45  ;;  %vm1516_vm7 = vcmask 130048   ;;  %vm1518_vm8 = vcmask 195584   ;;  %s4163_s26 = smov 8  }
  0x14   : > { %v705_v0 = vld [vmem:[%s684_s5] sm:$0xff]  ;;  %777 = vmatpush.bf16.msra.mxu0 %v3122_v14  ;;  %vm1673_vm12 = vcmask 523264  }
  0x15   : > { %v709_v1 = vsel %vm708_vm0, %v705_v0, 0.0  ;;  %v3187_v25 = vld [vmem:[%s4156_s4] ss:$0 sm:$0xff]  ;;  %s4146_s4 = smov 112   ;;  %v3458_v44 = vunpack.c.0.s8 %v800_v39  ;;  %v3465_v51 = vunpack.c.0.s8 %v824_v46 }
  0x16   : > { %710 = vadd.xlane.f32.xlu0 %v709_v1  ;;  %v3188_v28 = vld [vmem:[%s4157_s22] ss:$0 sm:$0xff]  ;;  %s4138_s22 = smov 16  }
  0x18   : > { %v3207_v3 = vpop.eup %3206  ;;  %778 = vmatpush.bf16.msra.mxu0 %v3121_v15 }
  0x19   : > { %v713_v4 = vmul.f32 32.0, %v3207_v3  ;;  %vm717_vm1 = vweird.f32 %v3207_v3 }
  0x1b   : > { %v714_v5 = vsub.f32 1.0, %v713_v4 }
  0x1d   : > { %v715_v6 = vmul.f32 %v3207_v3, %v714_v5 }
  0x1f   : > { %v716_v7 = vadd.f32 %v3207_v3, %v715_v6 }
  0x21   : > { %v3409_v8 = vsel %vm717_vm1, %v3207_v3, %v716_v7 }
  0x89   : > { %v711_v9 = vpop.xlane.xlu0 %710 }
  0x8a   : > { %v719_v10 = vmul.f32 %v3409_v8, %v711_v9 }
  0x8c   : > { %v720_v11 = vsub.f32 %v705_v0, %v719_v10 }
  0x8e   : > { %v721_v12 = vmul.f32 %v720_v11, %v720_v11 }
  0x90   : > { %v722_v13 = vsel %vm708_vm0, %v721_v12, 0.0 }
  0x91   : > { %723 = vadd.xlane.f32.xlu0 %v722_v13 }
 0x104   : > { %v724_v16 = vpop.xlane.xlu0 %723 }
 0x105   : > { %v725_v17 = vmul.f32 %v724_v16, %v3409_v8 }
 0x107   : > { %v726_v18 = vadd.f32 1e-12, %v725_v17 }
 0x109   : > { %3208 = vrsqrt.f32 %v726_v18  ;;  %vm733_vm3 = vweird.f32 %v726_v18 }
 0x10f   : > { %v3209_v19 = vpop.eup %3208 }
 0x110   : > { %v728_v20 = vmul.f32 %v3209_v19, %v726_v18  ;;  %vm734_vm2 = vweird.f32 %v3209_v19 }
 0x111   : > { %vm735_vm4 = vmor %vm733_vm3, %vm734_vm2 }
 0x112   : > { %v729_v21 = vmul.f32 %v3209_v19, %v728_v20 }
 0x114   : > { %v730_v22 = vmul.f32 0.5, %v729_v21 }
 0x116   : > { %v731_v23 = vsub.f32 1.5, %v730_v22 }
 0x118   : > { %v732_v24 = vmul.f32 %v3209_v19, %v731_v23 }
 0x11a   : > { %v736_v26 = vsel %vm735_vm4, %v3209_v19, %v732_v24 }
 0x11b   : > { %v737_v27 = vmul.f32 %v736_v26, %v720_v11 }
 0x11d   : > { %v741_v29 = vmul.f32 %v3187_v25, %v737_v27 }
 0x11f   : > { %v3426_v30 = vadd.f32 %v3188_v28, %v741_v29 }
 0x121   : > { %v751_v31 = vpack.c.bf16 %v3426_v30, %v3426_v30 }
 0x123   : > { %2977 = vmatmul.msk.bf16.vlgmr.msra.gmra.mxu0 %vm708_vm0, %v751_v31 }
 0x1a0   : > { %v780_v33 = vpop.f32.mrf.mxu0 }
 0x1a1   : > { %v3434_v34 = vadd.f32 %v3189_v32, %v780_v33 }
 0x1a3   : > { %791 = vrot.lane.b32.xlu2 %v3434_v34, %s3267_s27  ;;  %785 = vrot.lane.b32.xlu1 %v3434_v34, %s4145_s3  ;;  %v797_v48 = vrot.slane %v3434_v34, 4  ;;  %s4165_s3 = sshll.u32 %s4168_s25, 3 }
 0x1a8   : > { %v782_v35 = vpop.f32.mrf.mxu0 }
 0x1ab   : > { %905 = vrot.lane.b32.xlu2 %v3434_v34, %s4143_s0  ;;  %788 = vrot.lane.b32.xlu1 %v3434_v34, %s4146_s4  ;;  %s4158_s4 = smov 112  }
 0x1fd   : > { %v3444_v36 = vpop.permute.xlu2 %791 }
 0x1fe   : > { %911 = vrot.lane.b32.xlu2 %v3444_v36, %s4143_s0  ;;  %v807_v37 = vrot.slane %v3444_v36, 4 }
 0x215   : > { %v3449_v40 = vpop.permute.xlu1 %785 }
 0x216   : > { %v808_v41 = vsel %vm795_vm5, %v807_v37, %v3449_v40  ;;  %v809_v42 = vrot.slane %v3449_v40, 4  ;;  %907 = vrot.lane.b32.xlu0 %v3449_v40, %s4143_s0 }
 0x217   : > { %v814_v49 = vperm.slane %v808_v41, %v3458_v44 }
 0x218   : > { %v810_v43 = vsel %vm795_vm5, %v3444_v36, %v809_v42 }
 0x219   : > { %v818_v47 = vperm.slane %v810_v43, %v3458_v44  ;;  %v819_v57 = vrot.slane %v814_v49, 4 }
 0x21b   : > { %v831_v54 = vrot.slane %v818_v47, 4 }
 0x21d   : > { %v3463_v50 = vpop.permute.xlu1 %788 }
 0x21e   : > { %v794_v52 = vrot.slane %v3463_v50, 4  ;;  %v798_v53 = vsel %vm795_vm5, %v3463_v50, %v797_v48  ;;  %909 = vrot.lane.b32.xlu1 %v3463_v50, %s4143_s0 }
 0x21f   : > { %v806_v55 = vperm.slane %v798_v53, %v3458_v44 }
 0x220   : > { %v796_v56 = vsel %vm795_vm5, %v794_v52, %v3434_v34 }
 0x221   : > { %v802_v58 = vperm.slane %v796_v56, %v3458_v44  ;;  %v832_v59 = vsel %vm795_vm5, %v831_v54, %v806_v55  ;;  %v833_v60 = vrot.slane %v806_v55, 4 }
 0x222   : > { %v838_v61 = vperm.slane %v832_v59, %v3465_v51 }
 0x223   : > { %v820_v62 = vsel %vm795_vm5, %v819_v57, %v802_v58  ;;  %v821_v63 = vrot.slane %v802_v58, 4  ;;  %v834_v0 = vsel %vm795_vm5, %v818_v47, %v833_v60 }
 0x224   : > { %v826_v1 = vperm.slane %v820_v62, %v3465_v51  ;;  %v842_v2 = vperm.slane %v834_v0, %v3465_v51  ;;  %v847_v5 = vrot.slane %v838_v61, 4 }
 0x225   : > { %v822_v3 = vsel %vm795_vm5, %v814_v49, %v821_v63  ;;  %v906_v49 = vpop.permute.xlu2 %905 }
 0x226   : > { %v830_v4 = vperm.slane %v822_v3, %v3465_v51  ;;  %v849_v6 = vrot.slane %v842_v2, 4  ;;  %v843_v9 = vrot.slane %v826_v1, 4  ;;  %v848_v14 = vsel %vm795_vm5, 0.0, %v847_v5 }
 0x227   : > { %v919_v59 = vrot.slane %v906_v49, 4 }
 0x228   : > { %v850_v7 = vsel %vm795_vm5, 0.0, %v849_v6  ;;  %v845_v10 = vrot.slane %v830_v4, 4  ;;  %v862_v11 = vsel %vm795_vm5, %v849_v6, %v838_v61  ;;  %v844_v21 = vsel %vm795_vm5, 0.0, %v843_v9 }
 0x229   : > { %v867_v12 = vrot.slane %v850_v7, 4  ;;  %v866_v13 = vperm.slane %v862_v11, %v3458_v44 }
 0x22a   : > { %v846_v15 = vsel %vm795_vm5, 0.0, %v845_v10  ;;  %v851_v16 = vsel %vm795_vm5, %v845_v10, %v826_v1 }
 0x22b   : > { %v855_v17 = vperm.slane %v851_v16, %v3458_v44  ;;  %v856_v18 = vrot.slane %v846_v15, 4  ;;  %v868_v19 = vsel %vm795_vm5, %v867_v12, %v848_v14  ;;  %v887_v20 = vrot.slane %v866_v13, 4 }
 0x22c   : > { %v872_v22 = vperm.slane %v868_v19, %v3458_v44 }
 0x22d   : > { %v857_v23 = vsel %vm795_vm5, %v856_v18, %v844_v21  ;;  %v875_v24 = vrot.slane %v855_v17, 4 }
 0x22e   : > { %v861_v25 = vperm.slane %v857_v23, %v3458_v44  ;;  %v888_v26 = vsel %vm795_vm5, %v872_v22, %v887_v20  ;;  %v885_v27 = vrot.slane %v872_v22, 4 }
 0x22f   : > { %v896_v28 = vperm.slane %v888_v26, %v3465_v51 }
 0x230   : > { %v876_v29 = vsel %vm795_vm5, %v861_v25, %v875_v24  ;;  %v873_v31 = vrot.slane %v861_v25, 4  ;;  %v886_v32 = vsel %vm795_vm5, %v885_v27, %v866_v13 }
 0x231   : > { %v884_v33 = vperm.slane %v876_v29, %v3465_v51  ;;  %v901_v35 = vrot.slane %v896_v28, 4  ;;  %v892_v37 = vperm.slane %v886_v32, %v3465_v51 }
 0x232   : > { %v874_v38 = vsel %vm795_vm5, %v873_v31, %v855_v17 }
 0x233   : > { %v3504_v39 = vsel %vm795_vm5, %v901_v35, %v884_v33  ;;  %v880_v41 = vperm.slane %v874_v38, %v3465_v51  ;;  %v897_v42 = vrot.slane %v892_v37, 4  ;;  %v903_v43 = vrot.slane %v884_v33, 4 }
 0x235   : > { %v3508_v45 = vsel %vm795_vm5, %v897_v42, %v880_v41  ;;  %v899_v46 = vrot.slane %v880_v41, 4  ;;  %v3511_v47 = vsel %vm795_vm5, %v896_v28, %v903_v43 }
 0x237   : > { %v3514_v48 = vsel %vm795_vm5, %v892_v37, %v899_v46 }
 0x258   : > { %v912_v52 = vpop.permute.xlu2 %911 }
 0x259   : > { %v929_v55 = vrot.slane %v912_v52, 4 }
 0x288   : > { %v908_v53 = vpop.permute.xlu0 %907 }
 0x289   : > { %v931_v54 = vrot.slane %v908_v53, 4  ;;  %v930_v57 = vsel %vm795_vm5, %v929_v55, %v908_v53 }
 0x28a   : > { %v936_v60 = vperm.slane %v930_v57, %v3458_v44 }
 0x28b   : > { %v932_v56 = vsel %vm795_vm5, %v912_v52, %v931_v54 }
 0x28c   : > { %v940_v58 = vperm.slane %v932_v56, %v3458_v44  ;;  %v941_v3 = vrot.slane %v936_v60, 4 }
 0x28e   : > { %v953_v0 = vrot.slane %v940_v58, 4 }
 0x290   : > { %v910_v61 = vpop.permute.xlu1 %909 }
 0x291   : > { %v917_v62 = vrot.slane %v910_v61, 4  ;;  %v920_v63 = vsel %vm795_vm5, %v910_v61, %v919_v59 }
 0x292   : > { %v928_v1 = vperm.slane %v920_v63, %v3458_v44 }
 0x293   : > { %v918_v2 = vsel %vm795_vm5, %v917_v62, %v906_v49 }
 0x294   : > { %v924_v4 = vperm.slane %v918_v2, %v3458_v44  ;;  %v954_v5 = vsel %vm795_vm5, %v953_v0, %v928_v1  ;;  %v955_v6 = vrot.slane %v928_v1, 4 }
 0x295   : > { %v960_v7 = vperm.slane %v954_v5, %v3465_v51 }
 0x296   : > { %v942_v9 = vsel %vm795_vm5, %v941_v3, %v924_v4  ;;  %v943_v10 = vrot.slane %v924_v4, 4  ;;  %v956_v11 = vsel %vm795_vm5, %v940_v58, %v955_v6 }
 0x297   : > { %v948_v12 = vperm.slane %v942_v9, %v3465_v51  ;;  %v964_v13 = vperm.slane %v956_v11, %v3465_v51  ;;  %v969_v16 = vrot.slane %v960_v7, 4  ;;  %v3163_v11 = vpack.i.bf16 %v3449_v40, %v3434_v34 }
 0x298   : > { %v944_v14 = vsel %vm795_vm5, %v936_v60, %v943_v10 }
 0x299   : > { %v952_v15 = vperm.slane %v944_v14, %v3465_v51  ;;  %v971_v17 = vrot.slane %v964_v13, 4  ;;  %v965_v18 = vrot.slane %v948_v12, 4  ;;  %v970_v24 = vsel %vm795_vm5, 0.0, %v969_v16 }
 0x29b   : > { %v967_v19 = vrot.slane %v952_v15, 4  ;;  %v972_v20 = vsel %vm795_vm5, 0.0, %v971_v17  ;;  %v984_v21 = vsel %vm795_vm5, %v971_v17, %v960_v7  ;;  %v966_v32 = vsel %vm795_vm5, 0.0, %v965_v18 }
 0x29c   : > { %v988_v22 = vperm.slane %v984_v21, %v3458_v44  ;;  %v989_v23 = vrot.slane %v972_v20, 4 }
 0x29d   : > { %v968_v25 = vsel %vm795_vm5, 0.0, %v967_v19  ;;  %v973_v26 = vsel %vm795_vm5, %v967_v19, %v948_v12  ;;  %v3168_v12 = vpack.i.bf16 %v3444_v36, %v3463_v50 }
 0x29e   : > { %v977_v27 = vperm.slane %v973_v26, %v3458_v44  ;;  %v978_v28 = vrot.slane %v968_v25, 4  ;;  %v990_v29 = vsel %vm795_vm5, %v989_v23, %v970_v24  ;;  %v1009_v31 = vrot.slane %v988_v22, 4 }
 0x29f   : > { %v994_v33 = vperm.slane %v990_v29, %v3458_v44 }
 0x2a0   : > { %v979_v35 = vsel %vm795_vm5, %v978_v28, %v966_v32  ;;  %v997_v37 = vrot.slane %v977_v27, 4 }
 0x2a1   : > { %v983_v38 = vperm.slane %v979_v35, %v3458_v44  ;;  %v1010_v41 = vsel %vm795_vm5, %v994_v33, %v1009_v31  ;;  %v1007_v42 = vrot.slane %v994_v33, 4 }
 0x2a2   : > { %v1018_v43 = vperm.slane %v1010_v41, %v3465_v51 }
 0x2a3   : > { %v998_v46 = vsel %vm795_vm5, %v983_v38, %v997_v37  ;;  %v995_v49 = vrot.slane %v983_v38, 4  ;;  %v1008_v52 = vsel %vm795_vm5, %v1007_v42, %v988_v22 }
 0x2a4   : > { %v1006_v53 = vperm.slane %v998_v46, %v3465_v51  ;;  %v1023_v54 = vrot.slane %v1018_v43, 4  ;;  %v1014_v55 = vperm.slane %v1008_v52, %v3465_v51 }
 0x2a5   : > { %v996_v56 = vsel %vm795_vm5, %v995_v49, %v977_v27 }
 0x2a6   : > { %v1024_v57 = vsel %vm795_vm5, %v1023_v54, %v1006_v53  ;;  %v1002_v58 = vperm.slane %v996_v56, %v3465_v51  ;;  %v1019_v59 = vrot.slane %v1014_v55, 4  ;;  %v1025_v60 = vrot.slane %v1006_v53, 4 }
 0x2a7   : > { %2982 = vmatpush.xpose.msk.msra.mxu3 %vm1152_vm6, %v1024_v57 }
 0x2a8   : > { %v1020_v61 = vsel %vm795_vm5, %v1019_v59, %v1002_v58  ;;  %v1026_v62 = vsel %vm795_vm5, %v1018_v43, %v1025_v60  ;;  %v1021_v63 = vrot.slane %v1002_v58, 4 }
 0x2a9   : > { %2978 = vmatpush.xpose.msk.msra.mxu1 %vm1152_vm6, %v1020_v61 }
 0x2aa   : > { %2983 = vmatmul.msk.f32.vlgmr.msra.gmra.mxu3 %vm1152_vm6, %v3504_v39  ;;  %v1022_v0 = vsel %vm795_vm5, %v1014_v55, %v1021_v63  ;;  %v3573_v39 = vld [vmem:[%s687_s29] ss:$0 sm:$0xff]  ;;  %s4141_s29 = smov 64  }
 0x2ab   : > { %2980 = vmatpush.xpose.msk.msrb.mxu0 %vm1152_vm6, %v1022_v0 }
 0x2ac   : > { %2979 = vmatmul.msk.f32.vlgmr.msra.gmra.mxu1 %vm1152_vm6, %v3508_v45 }
 0x2ad   : > { %2984 = vmatpush.xpose.msk.msrb.mxu1 %vm1152_vm6, %v1026_v62 }
 0x2ae   : > { %2981 = vmatmul.msk.f32.vlgmr.msrb.gmra.mxu0 %vm1152_vm6, %v3514_v48 }
 0x2b4   : > { %2985 = vmatmul.msk.f32.vlgmr.msrb.gmra.mxu1 %vm1152_vm6, %v3511_v47 }
 0x329   : > { %v1176_v1 = vpop.f32.mrf.mxu1 }
 0x32a   : > { %v1177_v2 = vadd.f32 %v3573_v39, %v1176_v1 }
 0x32b   : > { %v1202_v3 = vpop.f32.mrf.mxu0 }
 0x32c   : > { %v1203_v4 = vadd.f32 %v3573_v39, %v1202_v3  ;;  %v1257_v45 = vsel %vm1152_vm6, %v1177_v2, -inf }
 0x32d   : > { %v1228_v5 = vpop.f32.mrf.mxu3  ;;  %1258 = vmax.xlane.f32.xlu1 %v1257_v45 }
 0x32e   : > { %v1229_v48 = vadd.f32 %v3573_v39, %v1228_v5  ;;  %v1260_v47 = vsel %vm1152_vm6, %v1203_v4, -inf }
 0x32f   : > { %1261 = vmax.xlane.f32.xlu0 %v1260_v47 }
 0x330   : > { %v1263_v6 = vsel %vm1152_vm6, %v1229_v48, -inf }
 0x331   : > { %1264 = vmax.xlane.f32.xlu2 %v1263_v6  ;;  %v1254_v7 = vpop.f32.mrf.mxu1 }
 0x332   : > { %v1255_v9 = vadd.f32 %v3573_v39, %v1254_v7 }
 0x334   : > { %v1266_v10 = vsel %vm1152_vm6, %v1255_v9, -inf }
 0x339   : > { %1267 = vmax.xlane.f32.xlu2 %v1266_v10 }
 0x346   : > { %3164 = vrot.lane.b32.xlu1 %v3163_v11, %s4141_s29 }
 0x351   : > { %3169 = vrot.lane.b32.xlu2 %v3168_v12, %s4141_s29  ;;  %s4159_s29 = smov 120  }
 0x3a0   : > { %v1259_v13 = vpop.xlane.xlu1 %1258 }
 0x3a1   : > { %v1269_v14 = vsub.f32 %v1177_v2, %v1259_v13 }
 0x3a2   : > { %v1262_v15 = vpop.xlane.xlu0 %1261 }
 0x3a3   : > { %v1273_v16 = vmul.f32 1.442695, %v1269_v14  ;;  %v1270_v17 = vsub.f32 %v1203_v4, %v1262_v15 }
 0x3a4   : > { %v1265_v18 = vpop.xlane.xlu2 %1264 }
 0x3a5   : > { %3210 = vpow2.f32 %v1273_v16  ;;  %v1275_v19 = vmul.f32 1.442695, %v1270_v17  ;;  %v1271_v50 = vsub.f32 %v1229_v48, %v1265_v18 }
 0x3a7   : > { %3212 = vpow2.f32 %v1275_v19  ;;  %v1277_v24 = vmul.f32 1.442695, %v1271_v50 }
 0x3ab   : > { %v3589_v20 = vpop.eup %3210 }
 0x3ac   : > { %v1268_v34 = vpop.xlane.xlu2 %1267  ;;  %v1281_v40 = vsel %vm1152_vm6, %v3589_v20, 0.0 }
 0x3ad   : > { %v3593_v21 = vpop.eup %3212  ;;  %v1272_v36 = vsub.f32 %v1255_v9, %v1268_v34  ;;  %1282 = vadd.xlane.f32.xlu0 %v1281_v40 }
 0x3ae   : > { %v1284_v22 = vsel %vm1152_vm6, %v3593_v21, 0.0 }
 0x3af   : > { %v1279_v23 = vmul.f32 1.442695, %v1272_v36  ;;  %1285 = vadd.xlane.f32.xlu1 %v1284_v22 }
 0x3b1   : > { %3214 = vpow2.f32 %v1279_v23 }
 0x3b2   : > { %3216 = vpow2.f32 %v1277_v24 }
 0x3b4   : > { %v3170_v25 = vpop.permute.xlu2 %3169 }
 0x3b5   : > { %v3172_v26 = vunpack.i.h.bf16 %v3170_v25  ;;  %v3171_v27 = vunpack.i.l.bf16 %v3170_v25 }
 0x3b7   : > { %v3597_v28 = vpop.eup %3214  ;;  %v1051_v32 = vrot.slane %v3172_v26, 4  ;;  %v1039_v33 = vrot.slane %v3171_v27, 4 }
 0x3b8   : > { %v3165_v29 = vpop.permute.xlu1 %3164  ;;  %v1290_v31 = vsel %vm1152_vm6, %v3597_v28, 0.0  ;;  %v3603_v46 = vpop.eup %3216 }
 0x3b9   : > { %v3167_v35 = vunpack.i.h.bf16 %v3165_v29  ;;  %v3166_v37 = vunpack.i.l.bf16 %v3165_v29  ;;  %1291 = vadd.xlane.f32.xlu0 %v1290_v31  ;;  %v1287_v59 = vsel %vm1152_vm6, %v3603_v46, 0.0 }
 0x3bb   : > { %v1052_v38 = vsel %vm795_vm5, %v1051_v32, %v3167_v35  ;;  %v1053_v41 = vrot.slane %v3167_v35, 4  ;;  %v1040_v42 = vsel %vm795_vm5, %v1039_v33, %v3166_v37  ;;  %v1041_v43 = vrot.slane %v3166_v37, 4 }
 0x3bc   : > { %v1058_v49 = vperm.slane %v1052_v38, %v3458_v44  ;;  %v1046_v52 = vperm.slane %v1040_v42, %v3458_v44 }
 0x3bd   : > { %v1054_v53 = vsel %vm795_vm5, %v3172_v26, %v1053_v41  ;;  %v1042_v54 = vsel %vm795_vm5, %v3171_v27, %v1041_v43 }
 0x3be   : > { %v1062_v55 = vperm.slane %v1054_v53, %v3458_v44  ;;  %v1063_v56 = vrot.slane %v1058_v49, 4  ;;  %v1050_v57 = vperm.slane %v1042_v54, %v3458_v44  ;;  %v1065_v58 = vrot.slane %v1046_v52, 4 }
 0x3c0   : > { %v1075_v60 = vrot.slane %v1062_v55, 4  ;;  %v1064_v61 = vsel %vm795_vm5, %v1063_v56, %v1046_v52  ;;  %v1066_v62 = vsel %vm795_vm5, %v1058_v49, %v1065_v58  ;;  %v1077_v63 = vrot.slane %v1050_v57, 4 }
 0x3c1   : > { %v1070_v0 = vperm.slane %v1064_v61, %v3465_v51  ;;  %v1074_v1 = vperm.slane %v1066_v62, %v3465_v51  ;;  %1288 = vadd.xlane.f32.xlu0 %v1287_v59 }
 0x3c2   : > { %v1076_v2 = vsel %vm795_vm5, %v1075_v60, %v1050_v57  ;;  %v1078_v3 = vsel %vm795_vm5, %v1062_v55, %v1077_v63 }
 0x3c3   : > { %v1082_v4 = vperm.slane %v1076_v2, %v3465_v51  ;;  %v1086_v45 = vperm.slane %v1078_v3, %v3465_v51  ;;  %v1087_v5 = vrot.slane %v1070_v0, 4  ;;  %v1089_v48 = vrot.slane %v1074_v1, 4 }
 0x3c5   : > { %v1090_v47 = vsel %vm795_vm5, 0.0, %v1089_v48  ;;  %v1091_v6 = vrot.slane %v1082_v4, 4  ;;  %v1093_v7 = vrot.slane %v1086_v45, 4  ;;  %v1095_v10 = vsel %vm795_vm5, %v1089_v48, %v1070_v0 }
 0x3c6   : > { %v1100_v9 = vrot.slane %v1090_v47, 4  ;;  %v1088_v11 = vsel %vm795_vm5, 0.0, %v1087_v5  ;;  %v1099_v13 = vperm.slane %v1095_v10, %v3458_v44 }
 0x3c7   : > { %v1094_v12 = vsel %vm795_vm5, 0.0, %v1093_v7  ;;  %v1106_v14 = vsel %vm795_vm5, %v1093_v7, %v1082_v4  ;;  %v1092_v18 = vsel %vm795_vm5, 0.0, %v1091_v6 }
 0x3c8   : > { %v1111_v15 = vrot.slane %v1094_v12, 4  ;;  %v1101_v16 = vsel %vm795_vm5, %v1100_v9, %v1088_v11  ;;  %v1110_v17 = vperm.slane %v1106_v14, %v3458_v44  ;;  %v1119_v34 = vrot.slane %v1099_v13, 4 }
 0x3c9   : > { %v1105_v19 = vperm.slane %v1101_v16, %v3458_v44 }
 0x3ca   : > { %v1112_v40 = vsel %vm795_vm5, %v1111_v15, %v1092_v18  ;;  %v1131_v36 = vrot.slane %v1110_v17, 4 }
 0x3cb   : > { %v1116_v50 = vperm.slane %v1112_v40, %v3458_v44  ;;  %v1117_v22 = vrot.slane %v1105_v19, 4  ;;  %v1120_v23 = vsel %vm795_vm5, %v1105_v19, %v1119_v34 }
 0x3cc   : > { %v1128_v26 = vperm.slane %v1120_v23, %v3465_v51 }
 0x3cd   : > { %v1118_v24 = vsel %vm795_vm5, %v1117_v22, %v1099_v13  ;;  %v1129_v25 = vrot.slane %v1116_v50, 4  ;;  %v1132_v27 = vsel %vm795_vm5, %v1116_v50, %v1131_v36 }
 0x3ce   : > { %v1124_v29 = vperm.slane %v1118_v24, %v3465_v51  ;;  %v1140_v31 = vperm.slane %v1132_v27, %v3465_v51  ;;  %v1147_v38 = vrot.slane %v1128_v26, 4 }
 0x3cf   : > { %v1130_v32 = vsel %vm795_vm5, %v1129_v25, %v1110_v17 }
 0x3d0   : > { %v1136_v33 = vperm.slane %v1130_v32, %v3465_v51  ;;  %v1143_v35 = vrot.slane %v1124_v29, 4  ;;  %v1145_v37 = vrot.slane %v1140_v31, 4  ;;  %v1148_v52 = vsel %vm795_vm5, %v1140_v31, %v1147_v38 }
 0x3d2   : > { %v1144_v41 = vsel %vm795_vm5, %v1136_v33, %v1143_v35  ;;  %v1146_v42 = vsel %vm795_vm5, %v1145_v37, %v1128_v26  ;;  %v1141_v43 = vrot.slane %v1136_v33, 4 }
 0x3d3   : > { %1342 = vmatpush.msrb.mxu3 %v1144_v41  ;;  %1365 = vmatpush.msra.mxu1 %v1146_v42 }
 0x3d4   : > { %v1142_v49 = vsel %vm795_vm5, %v1141_v43, %v1124_v29 }
 0x3d5   : > { %1319 = vmatpush.msra.mxu2 %v1142_v49 }
 0x3d7   : > { %1388 = vmatpush.msrb.mxu2 %v1148_v52 }
 0x420   : > { %v1283_v53 = vpop.xlane.xlu0 %1282 }
 0x421   : > { %3218 = vrcp.f32 %v1283_v53 }
 0x422   : > { %v1286_v54 = vpop.xlane.xlu1 %1285 }
 0x423   : > { %3220 = vrcp.f32 %v1286_v54 }
 0x427   : > { %v3219_v55 = vpop.eup %3218 }
 0x428   : > { %v1297_v56 = vmul.f32 %v3219_v55, %v3589_v20 }
 0x429   : > { %v3221_v57 = vpop.eup %3220 }
 0x42a   : > { %2986 = vmatmul.msk.f32.vlgmr.msra.gmra.mxu2 %vm1152_vm6, %v1297_v56  ;;  %v1298_v58 = vmul.f32 %v3221_v57, %v3593_v21 }
 0x42c   : > { %v1292_v59 = vpop.xlane.xlu0 %1291  ;;  %2987 = vmatmul.msk.f32.vlgmr.msrb.gmra.mxu3 %vm1152_vm6, %v1298_v58 }
 0x42d   : > { %3222 = vrcp.f32 %v1292_v59 }
 0x433   : > { %v3223_v60 = vpop.eup %3222 }
 0x434   : > { %v1289_v61 = vpop.xlane.xlu0 %1288  ;;  %v1300_v62 = vmul.f32 %v3223_v60, %v3597_v28 }
 0x435   : > { %3224 = vrcp.f32 %v1289_v61 }
 0x436   : > { %2989 = vmatmul.msk.f32.vlgmr.msrb.gmra.mxu2 %vm1152_vm6, %v1300_v62 }
 0x43b   : > { %v3225_v63 = vpop.eup %3224 }
 0x43c   : > { %v1299_v0 = vmul.f32 %v3225_v63, %v3603_v46 }
 0x43e   : > { %2988 = vmatmul.msk.f32.vlgmr.msra.gmra.mxu1 %vm1152_vm6, %v1299_v0 }
 0x4ad   : > { %v1321_v20 = vpop.f32.mrf.mxu2 }
 0x4ae   : > { %v1395_v3 = vrot.slane %v1321_v20, 4 }
 0x4af   : > { %v1344_v1 = vpop.f32.mrf.mxu3 }
 0x4b0   : > { %v1407_v2 = vrot.slane %v1344_v1, 4 }
 0x4b9   : > { %v1390_v21 = vpop.f32.mrf.mxu2 }
 0x4ba   : > { %v1405_v4 = vrot.slane %v1390_v21, 4  ;;  %v1408_v45 = vsel %vm795_vm5, %v1390_v21, %v1407_v2 }
 0x4bb   : > { %v1416_v5 = vperm.slane %v1408_v45, %v3458_v44  ;;  %v1367_v48 = vpop.f32.mrf.mxu1 }
 0x4bc   : > { %v1406_v28 = vsel %vm795_vm5, %v1405_v4, %v1344_v1  ;;  %v1393_v47 = vrot.slane %v1367_v48, 4  ;;  %v1396_v6 = vsel %vm795_vm5, %v1367_v48, %v1395_v3  ;;  %v3123_v48 = vld [vmem:[%s4120_s7] sm:$0xff] }
 0x4bd   : > { %v1412_v46 = vperm.slane %v1406_v28, %v3458_v44  ;;  %v1429_v7 = vrot.slane %v1416_v5, 4  ;;  %v1404_v9 = vperm.slane %v1396_v6, %v3458_v44 }
 0x4be   : > { %v1394_v10 = vsel %vm795_vm5, %v1393_v47, %v1321_v20 }
 0x4bf   : > { %v1417_v11 = vrot.slane %v1412_v46, 4  ;;  %v1400_v12 = vperm.slane %v1394_v10, %v3458_v44  ;;  %v1430_v13 = vsel %vm795_vm5, %v1429_v7, %v1404_v9  ;;  %v1431_v14 = vrot.slane %v1404_v9, 4 }
 0x4c0   : > { %v1436_v15 = vperm.slane %v1430_v13, %v3465_v51 }
 0x4c1   : > { %v1418_v16 = vsel %vm795_vm5, %v1417_v11, %v1400_v12  ;;  %v1419_v17 = vrot.slane %v1400_v12, 4  ;;  %v1432_v18 = vsel %vm795_vm5, %v1416_v5, %v1431_v14  ;;  %v3124_v5 = vld [vmem:[%s4120_s7 + $0x8] sm:$0xff]  ;;  %v3190_v11 = vld [vmem:[%s4121_s8] ss:$0 sm:$0xff] }
 0x4c2   : > { %v1424_v19 = vperm.slane %v1418_v16, %v3465_v51  ;;  %v1440_v34 = vperm.slane %v1432_v18, %v3465_v51  ;;  %v1445_v50 = vrot.slane %v1436_v15, 4  ;;  %1550 = vmatpush.bf16.msra.mxu3 %v3124_v5 }
 0x4c3   : > { %v1420_v40 = vsel %vm795_vm5, %v1412_v46, %v1419_v17 }
 0x4c4   : > { %v1428_v36 = vperm.slane %v1420_v40, %v3465_v51  ;;  %v1447_v22 = vrot.slane %v1440_v34, 4  ;;  %v1441_v23 = vrot.slane %v1424_v19, 4  ;;  %v1446_v32 = vsel %vm795_vm5, 0.0, %v1445_v50 }
 0x4c6   : > { %v1443_v24 = vrot.slane %v1428_v36, 4  ;;  %v1448_v25 = vsel %vm795_vm5, 0.0, %v1447_v22  ;;  %v1460_v26 = vsel %vm795_vm5, %v1447_v22, %v1436_v15  ;;  %v1442_v42 = vsel %vm795_vm5, 0.0, %v1441_v23  ;;  %1551 = vmatpush.bf16.msra.mxu3 %v3123_v48  ;;  %v3126_v36 = vld [vmem:[%s4124_s11 + $0x8] sm:$0xff] }
 0x4c7   : > { %v1464_v27 = vperm.slane %v1460_v26, %v3458_v44  ;;  %v1465_v29 = vrot.slane %v1448_v25, 4  ;;  %1620 = vmatpush.bf16.msra.mxu0 %v3126_v36  ;;  %v3196_v36 = vld [vmem:[%s4129_s16] ss:$0 sm:$0xff] }
 0x4c8   : > { %v1444_v31 = vsel %vm795_vm5, 0.0, %v1443_v24  ;;  %v1449_v33 = vsel %vm795_vm5, %v1443_v24, %v1424_v19 }
 0x4c9   : > { %v1466_v35 = vsel %vm795_vm5, %v1465_v29, %v1446_v32  ;;  %v1453_v37 = vperm.slane %v1449_v33, %v3458_v44  ;;  %v1454_v38 = vrot.slane %v1444_v31, 4  ;;  %v1485_v41 = vrot.slane %v1464_v27, 4  ;;  %v3191_v32 = vld [vmem:[%s4122_s9] ss:$0 sm:$0xff] }
 0x4ca   : > { %v1470_v43 = vperm.slane %v1466_v35, %v3458_v44  ;;  %v3192_v35 = vld [vmem:[%s4123_s10] ss:$0 sm:$0xff] }
 0x4cb   : > { %v1455_v49 = vsel %vm795_vm5, %v1454_v38, %v1442_v42  ;;  %v1473_v52 = vrot.slane %v1453_v37, 4 }
 0x4cc   : > { %v1459_v53 = vperm.slane %v1455_v49, %v3458_v44  ;;  %v1486_v54 = vsel %vm795_vm5, %v1470_v43, %v1485_v41  ;;  %v1483_v55 = vrot.slane %v1470_v43, 4  ;;  %v3130_v43 = vld [vmem:[%s4126_s13 + $0x18] sm:$0xff]  ;;  %v3129_v49 = vld [vmem:[%s4126_s13 + $0x10] sm:$0xff] }
 0x4cd   : > { %v1494_v56 = vperm.slane %v1486_v54, %v3465_v51  ;;  %1681 = vmatpush.bf16.msrb.mxu1 %v3130_v43  ;;  %v3193_v54 = vld [vmem:[%s4125_s12] ss:$0 sm:$0xff] }
 0x4ce   : > { %v1474_v57 = vsel %vm795_vm5, %v1459_v53, %v1473_v52  ;;  %v1471_v58 = vrot.slane %v1459_v53, 4  ;;  %v1484_v59 = vsel %vm795_vm5, %v1483_v55, %v1464_v27  ;;  %v3128_v52 = vld [vmem:[%s4126_s13 + $0x8] sm:$0xff]  ;;  %v3127_v53 = vld [vmem:[%s4126_s13] sm:$0xff] }
 0x4cf   : > { %v1482_v60 = vperm.slane %v1474_v57, %v3465_v51  ;;  %v1499_v61 = vrot.slane %v1494_v56, 4  ;;  %v1490_v62 = vperm.slane %v1484_v59, %v3465_v51 }
 0x4d0   : > { %v1472_v63 = vsel %vm795_vm5, %v1471_v58, %v1453_v37 }
 0x4d1   : > { %v1500_v0 = vsel %vm795_vm5, %v1499_v61, %v1482_v60  ;;  %v1478_v20 = vperm.slane %v1472_v63, %v3465_v51  ;;  %v1495_v1 = vrot.slane %v1490_v62, 4  ;;  %v1501_v4 = vrot.slane %v1482_v60, 4  ;;  %1682 = vmatpush.bf16.msrb.mxu1 %v3129_v49 }
 0x4d2   : > { %1508 = vrot.lane.b32.xlu0 %v1500_v0, %s4138_s22  ;;  %s4164_s22 = smov 24  }
 0x4d3   : > { %v1497_v2 = vrot.slane %v1478_v20, 4  ;;  %v1496_v21 = vsel %vm795_vm5, %v1495_v1, %v1478_v20  ;;  %v1502_v45 = vsel %vm795_vm5, %v1494_v56, %v1501_v4 }
 0x4d5   : > { %v1498_v3 = vsel %vm795_vm5, %v1490_v62, %v1497_v2  ;;  %1683 = vmatpush.bf16.msrb.mxu1 %v3128_v52 }
 0x4d6   : > { %1504 = vrot.lane.b32.xlu2 %v1498_v3, %s4140_s23  ;;  %s4160_s23 = smov 96  }
 0x4d9   : > { %1684 = vmatpush.bf16.msrb.mxu1 %v3127_v53 }
 0x4de   : > { %1512 = vrot.lane.b32.xlu2 %v1502_v45, %s4139_s24  ;;  %s4162_s24 = smov 16  }
 0x530   : > { %v1505_v28 = vpop.permute.xlu2 %1504 }
 0x531   : > { %v1515_v47 = vsel %vm1152_vm6, %v1496_v21, %v1505_v28  ;;  %v3194_v21 = vld [vmem:[%s4127_s14] ss:$0 sm:$0xff] }
 0x538   : > { %v1513_v46 = vpop.permute.xlu2 %1512 }
 0x544   : > { %v1509_v6 = vpop.permute.xlu0 %1508 }
 0x545   : > { %v1517_v7 = vsel %vm1516_vm7, %v1515_v47, %v1509_v6 }
 0x546   : > { %v1519_v9 = vsel %vm1518_vm8, %v1517_v7, %v1513_v46 }
 0x547   : > { %v1524_v10 = vpack.c.bf16 %v1519_v9, %v1519_v9  ;;  %v3132_v9 = vld [vmem:[%s4155_s1 + $0x18] sm:$0xff] }
 0x548   : > { %1755 = vmatpush.bf16.msra.mxu2 %v3132_v9 }
 0x549   : > { %2998 = vmatmul.msk.bf16.vlgmr.msra.gmra.mxu3 %vm708_vm0, %v1524_v10  ;;  %v3131_v10 = vld [vmem:[%s4155_s1 + $0x10] sm:$0xff] }
 0x54c   : > { %1756 = vmatpush.bf16.msra.mxu2 %v3131_v10 }
 0x5cc   : > { %v1553_v12 = vpop.f32.mrf.mxu3 }
 0x5cd   : > { %v1554_v13 = vadd.f32 %v3190_v11, %v1553_v12 }
 0x5cf   : > { %v1557_v14 = vadd.f32 %v1554_v13, %v3426_v30  ;;  %v3125_v30 = vld [vmem:[%s4124_s11] sm:$0xff] }
 0x5d0   : > { %1621 = vmatpush.bf16.msra.mxu0 %v3125_v30 }
 0x5d1   : > { %v1560_v15 = vsel %vm708_vm0, %v1557_v14, 0.0 }
 0x5d2   : > { %1561 = vadd.xlane.f32.xlu2 %v1560_v15 }
 0x5d4   : > { %v1555_v16 = vpop.f32.mrf.mxu3 }
 0x645   : > { %v1562_v17 = vpop.xlane.xlu2 %1561 }
 0x646   : > { %v1563_v18 = vmul.f32 %v1562_v17, %v3409_v8 }
 0x648   : > { %v1564_v19 = vsub.f32 %v1557_v14, %v1563_v18 }
 0x64a   : > { %v1565_v34 = vmul.f32 %v1564_v19, %v1564_v19 }
 0x64c   : > { %v1566_v40 = vsel %vm708_vm0, %v1565_v34, 0.0  ;;  %v3195_v34 = vld [vmem:[%s4128_s15] ss:$0 sm:$0xff] }
 0x64d   : > { %1567 = vadd.xlane.f32.xlu0 %v1566_v40 }
 0x6c0   : > { %v1568_v50 = vpop.xlane.xlu0 %1567 }
 0x6c1   : > { %v1569_v22 = vmul.f32 %v1568_v50, %v3409_v8 }
 0x6c3   : > { %v1570_v23 = vadd.f32 1e-12, %v1569_v22 }
 0x6c5   : > { %3226 = vrsqrt.f32 %v1570_v23  ;;  %vm1577_vm10 = vweird.f32 %v1570_v23 }
 0x6cb   : > { %v3227_v24 = vpop.eup %3226 }
 0x6cc   : > { %v1572_v25 = vmul.f32 %v3227_v24, %v1570_v23  ;;  %vm1578_vm9 = vweird.f32 %v3227_v24 }
 0x6cd   : > { %vm1579_vm11 = vmor %vm1577_vm10, %vm1578_vm9 }
 0x6ce   : > { %v1573_v26 = vmul.f32 %v3227_v24, %v1572_v25 }
 0x6d0   : > { %v1574_v27 = vmul.f32 0.5, %v1573_v26 }
 0x6d2   : > { %v1575_v29 = vsub.f32 1.5, %v1574_v27 }
 0x6d4   : > { %v1576_v31 = vmul.f32 %v3227_v24, %v1575_v29 }
 0x6d6   : > { %v1580_v33 = vsel %vm1579_vm11, %v3227_v24, %v1576_v31  ;;  %v3197_v24 = vld [vmem:[%s4119_s6 + $0x1] ss:$0 sm:$0xff]  ;;  %vm2811_vm11 = vcmask 59392  }
 0x6d7   : > { %v1581_v37 = vmul.f32 %v1580_v33, %v1564_v19 }
 0x6d9   : > { %v1585_v38 = vmul.f32 %v3191_v32, %v1581_v37 }
 0x6db   : > { %v1589_v41 = vadd.f32 %v3192_v35, %v1585_v38 }
 0x6dd   : > { %v1594_v42 = vpack.c.bf16 %v1589_v41, %v1589_v41 }
 0x6df   : > { %3007 = vmatmul.msk.bf16.vlgmr.msra.gmra.mxu0 %vm708_vm0, %v1594_v42 }
 0x75c   : > { %v1623_v55 = vpop.f32.mrf.mxu0 }
 0x75d   : > { %v1624_v56 = vadd.f32 %v3193_v54, %v1623_v55 }
 0x75f   : > { %v1627_v57 = vmul.f32 %v1624_v56, %v1624_v56 }
 0x761   : > { %v1628_v58 = vmul.f32 %v1627_v57, %v1624_v56 }
 0x763   : > { %v1629_v59 = vmul.f32 0.044715, %v1628_v58 }
 0x764   : > { %v1625_v60 = vpop.f32.mrf.mxu0 }
 0x765   : > { %v1630_v61 = vadd.f32 %v1629_v59, %v1624_v56 }
 0x767   : > { %v1631_v62 = vmul.f32 0.7978846, %v1630_v61 }
 0x769   : > { %3228 = vtanh.f32 %v1631_v62 }
 0x76f   : > { %v3229_v63 = vpop.eup %3228 }
 0x770   : > { %v1633_v0 = vadd.f32 1.0, %v3229_v63 }
 0x772   : > { %v1634_v20 = vmul.f32 0.5, %v1633_v0 }
 0x774   : > { %v1635_v1 = vmul.f32 %v1634_v20, %v1624_v56 }
 0x776   : > { %v1644_v2 = vpack.c.bf16 %v1635_v1, %v1635_v1 }
 0x778   : > { %3024 = vmatmul.msk.bf16.vlgmr.msrb.gmra.mxu1 %vm1673_vm12, %v1644_v2 }
 0x7f5   : > { %v1686_v3 = vpop.f32.mrf.mxu1 }
 0x7f6   : > { %v1687_v4 = vadd.f32 %v3194_v21, %v1686_v3 }
 0x7f8   : > { %v1690_v45 = vadd.f32 %v1687_v4, %v1589_v41 }
 0x7fa   : > { %v1693_v5 = vsel %vm708_vm0, %v1690_v45, 0.0 }
 0x7fb   : > { %1694 = vadd.xlane.f32.xlu1 %v1693_v5 }
 0x7fd   : > { %v1688_v48 = vpop.f32.mrf.mxu1 }
 0x86e   : > { %v1695_v28 = vpop.xlane.xlu1 %1694 }
 0x86f   : > { %v1696_v47 = vmul.f32 %v1695_v28, %v3409_v8 }
 0x871   : > { %v1697_v6 = vsub.f32 %v1690_v45, %v1696_v47 }
 0x873   : > { %v1698_v46 = vmul.f32 %v1697_v6, %v1697_v6 }
 0x875   : > { %v1699_v7 = vsel %vm708_vm0, %v1698_v46, 0.0 }
 0x876   : > { %1700 = vadd.xlane.f32.xlu1 %v1699_v7 }
 0x8e9   : > { %v1701_v11 = vpop.xlane.xlu1 %1700 }
 0x8ea   : > { %v1702_v12 = vmul.f32 %v1701_v11, %v3409_v8 }
 0x8ec   : > { %v1703_v13 = vadd.f32 1e-12, %v1702_v12 }
 0x8ee   : > { %3230 = vrsqrt.f32 %v1703_v13  ;;  %vm1710_vm14 = vweird.f32 %v1703_v13 }
 0x8f4   : > { %v3231_v14 = vpop.eup %3230 }
 0x8f5   : > { %v1705_v15 = vmul.f32 %v3231_v14, %v1703_v13  ;;  %vm1711_vm13 = vweird.f32 %v3231_v14 }
 0x8f6   : > { %vm1712_vm15 = vmor %vm1710_vm14, %vm1711_vm13  ;;  %vm2807_vm13 = vcmask 1042434   ;;  %vm2815_vm14 = vcmask 2048  }
 0x8f7   : > { %v1706_v16 = vmul.f32 %v3231_v14, %v1705_v15 }
 0x8f9   : > { %v1707_v17 = vmul.f32 0.5, %v1706_v16 }
 0x8fb   : > { %v1708_v18 = vsub.f32 1.5, %v1707_v17 }
 0x8fd   : > { %v1709_v19 = vmul.f32 %v3231_v14, %v1708_v18 }
 0x8ff   : > { %v1713_v40 = vsel %vm1712_vm15, %v3231_v14, %v1709_v19 }
 0x900   : > { %v1714_v30 = vmul.f32 %v1713_v40, %v1697_v6 }
 0x902   : > { %v1718_v50 = vmul.f32 %v3195_v34, %v1714_v30 }
 0x904   : > { %v3762_v22 = vadd.f32 %v3196_v36, %v1718_v50 }
 0x906   : > { %v1728_v23 = vpack.c.bf16 %v3762_v22, %v3762_v22 }
 0x908   : > { %3038 = vmatmul.msk.bf16.vlgmr.msra.gmra.mxu2 %vm708_vm0, %v1728_v23 }
 0x98b   : > { %v1758_v25 = vpop.f32.mrf.mxu2 }
 0x98c   : > { %v3770_v26 = vadd.f32 %v3197_v24, %v1758_v25 }
 0x98e   : > { %1769 = vrot.lane.b32.xlu0 %v3770_v26, %s3267_s27  ;;  %1766 = vrot.lane.b32.xlu2 %v3770_v26, %s4158_s4  ;;  %v1774_v33 = vrot.slane %v3770_v26, 4  ;;  %s4161_s27 = smov 64  }
 0x98f   : > { %1763 = vrot.lane.b32.xlu1 %v3770_v26, %s4159_s29 }
 0x993   : > { %v1760_v27 = vpop.f32.mrf.mxu2 }
 0x997   : > { %1882 = vrot.lane.b32.xlu1 %v3770_v26, %s4160_s23 }
 0x9e8   : > { %v3780_v29 = vpop.permute.xlu2 %1766 }
 0x9e9   : > { %1886 = vrot.lane.b32.xlu1 %v3780_v29, %s4160_s23  ;;  %v1772_v37 = vrot.slane %v3780_v29, 4  ;;  %v1775_v38 = vsel %vm795_vm5, %v3780_v29, %v1774_v33 }
 0x9ea   : > { %v1783_v49 = vperm.slane %v1775_v38, %v3458_v44 }
 0x9eb   : > { %v1773_v43 = vsel %vm795_vm5, %v1772_v37, %v3770_v26 }
 0x9ec   : > { %v1779_v54 = vperm.slane %v1773_v43, %v3458_v44  ;;  %v1810_v55 = vrot.slane %v1783_v49, 4 }
 0x9ee   : > { %v1798_v60 = vrot.slane %v1779_v54, 4 }
 0xa00   : > { %v3784_v31 = vpop.permute.xlu0 %1769 }
 0xa01   : > { %v3786_v32 = vpop.permute.xlu1 %1763  ;;  %1888 = vrot.lane.b32.xlu0 %v3784_v31, %s4160_s23  ;;  %v1784_v41 = vrot.slane %v3784_v31, 4 }
 0xa02   : > { %1884 = vrot.lane.b32.xlu2 %v3786_v32, %s4160_s23  ;;  %v1786_v35 = vrot.slane %v3786_v32, 4  ;;  %s695_s23 = scalar_lea.vmem %s4132_s19, %s4165_s3 }
 0xa03   : > { %v1785_v52 = vsel %vm795_vm5, %v1784_v41, %v3786_v32 }
 0xa04   : > { %v1787_v42 = vsel %vm795_vm5, %v3784_v31, %v1786_v35  ;;  %v1791_v56 = vperm.slane %v1785_v52, %v3458_v44 }
 0xa05   : > { %v1795_v53 = vperm.slane %v1787_v42, %v3458_v44 }
 0xa06   : > { %v1796_v61 = vrot.slane %v1791_v56, 4  ;;  %v1799_v62 = vsel %vm795_vm5, %v1791_v56, %v1798_v60 }
 0xa07   : > { %v1808_v57 = vrot.slane %v1795_v53, 4  ;;  %v1811_v58 = vsel %vm795_vm5, %v1795_v53, %v1810_v55  ;;  %v1807_v20 = vperm.slane %v1799_v62, %v3465_v51 }
 0xa08   : > { %v1819_v63 = vperm.slane %v1811_v58, %v3465_v51  ;;  %v1797_v1 = vsel %vm795_vm5, %v1796_v61, %v1779_v54 }
 0xa09   : > { %v1883_v59 = vpop.permute.xlu1 %1882  ;;  %v1809_v0 = vsel %vm795_vm5, %v1808_v57, %v1783_v49  ;;  %v1803_v4 = vperm.slane %v1797_v1, %v3465_v51  ;;  %v1822_v45 = vrot.slane %v1807_v20, 4 }
 0xa0a   : > { %v1815_v2 = vperm.slane %v1809_v0, %v3465_v51  ;;  %v1826_v21 = vrot.slane %v1819_v63, 4  ;;  %v1896_v28 = vrot.slane %v1883_v59, 4 }
 0xa0b   : > { %v1820_v46 = vrot.slane %v1803_v4, 4  ;;  %v1823_v7 = vsel %vm795_vm5, 0.0, %v1822_v45  ;;  %v1828_v53 = vsel %vm795_vm5, %v1822_v45, %v1803_v4 }
 0xa0c   : > { %v1824_v5 = vrot.slane %v1815_v2, 4  ;;  %v1827_v48 = vsel %vm795_vm5, 0.0, %v1826_v21  ;;  %v1833_v14 = vrot.slane %v1823_v7, 4  ;;  %v1839_v19 = vsel %vm795_vm5, %v1826_v21, %v1815_v2 }
 0xa0d   : > { %v1844_v9 = vrot.slane %v1827_v48, 4  ;;  %v1821_v16 = vsel %vm795_vm5, 0.0, %v1820_v46  ;;  %v1843_v25 = vperm.slane %v1839_v19, %v3458_v44  ;;  %v1832_v1 = vperm.slane %v1828_v53, %v3458_v44 }
 0xa0e   : > { %v1825_v12 = vsel %vm795_vm5, 0.0, %v1824_v5  ;;  %v1834_v24 = vsel %vm795_vm5, %v1833_v14, %v1821_v16 }
 0xa0f   : > { %v1845_v34 = vsel %vm795_vm5, %v1844_v9, %v1825_v12  ;;  %v1838_v52 = vperm.slane %v1834_v24, %v3458_v44  ;;  %v1864_v58 = vrot.slane %v1843_v25, 4 }
 0xa10   : > { %v1849_v27 = vperm.slane %v1845_v34, %v3458_v44 }
 0xa11   : > { %v1850_v2 = vrot.slane %v1838_v52, 4 }
 0xa12   : > { %v1865_v7 = vsel %vm795_vm5, %v1849_v27, %v1864_v58 }
 0xa5b   : > { %v1887_v3 = vpop.permute.xlu1 %1886 }
 0xa5c   : > { %v1894_v47 = vrot.slane %v1887_v3, 4  ;;  %v1897_v6 = vsel %vm795_vm5, %v1887_v3, %v1896_v28  ;;  %v1885_v10 = vpop.permute.xlu2 %1884 }
 0xa5d   : > { %v1905_v13 = vperm.slane %v1897_v6, %v3458_v44  ;;  %v1908_v15 = vrot.slane %v1885_v10, 4 }
 0xa5e   : > { %v1895_v11 = vsel %vm795_vm5, %v1894_v47, %v1883_v59  ;;  %v1862_v59 = vrot.slane %v1849_v27, 4 }
 0xa5f   : > { %v1901_v17 = vperm.slane %v1895_v11, %v3458_v44  ;;  %v1932_v30 = vrot.slane %v1905_v13, 4 }
 0xa60   : > { %v1863_v9 = vsel %vm795_vm5, %v1862_v59, %v1843_v25 }
 0xa61   : > { %v1920_v33 = vrot.slane %v1901_v17, 4  ;;  %v1869_v19 = vperm.slane %v1863_v9, %v3465_v51 }
 0xa73   : > { %v1889_v18 = vpop.permute.xlu0 %1888 }
 0xa74   : > { %v1906_v40 = vrot.slane %v1889_v18, 4  ;;  %v1909_v36 = vsel %vm795_vm5, %v1889_v18, %v1908_v15  ;;  %v1852_v15 = vrot.slane %v1832_v1, 4  ;;  %v1851_v18 = vsel %vm795_vm5, %v1850_v2, %v1832_v1 }
 0xa75   : > { %v1917_v50 = vperm.slane %v1909_v36, %v3458_v44 }
 0xa76   : > { %v1907_v23 = vsel %vm795_vm5, %v1906_v40, %v1885_v10  ;;  %v1853_v27 = vsel %vm795_vm5, %v1838_v52, %v1852_v15 }
 0xa77   : > { %v1913_v35 = vperm.slane %v1907_v23, %v3458_v44  ;;  %v1930_v37 = vrot.slane %v1917_v50, 4  ;;  %v1933_v38 = vsel %vm795_vm5, %v1917_v50, %v1932_v30  ;;  %v1861_v53 = vperm.slane %v1853_v27, %v3465_v51 }
 0xa78   : > { %v1941_v41 = vperm.slane %v1933_v38, %v3465_v51 }
 0xa79   : > { %v1918_v42 = vrot.slane %v1913_v35, 4  ;;  %v1921_v43 = vsel %vm795_vm5, %v1913_v35, %v1920_v33  ;;  %v1931_v49 = vsel %vm795_vm5, %v1930_v37, %v1905_v13  ;;  %v1857_v33 = vperm.slane %v1851_v18, %v3465_v51 }
 0xa7a   : > { %v1929_v54 = vperm.slane %v1921_v43, %v3465_v51  ;;  %v1937_v55 = vperm.slane %v1931_v49, %v3465_v51  ;;  %v1948_v56 = vrot.slane %v1941_v41, 4  ;;  %v1874_v43 = vrot.slane %v1869_v19, 4 }
 0xa7b   : > { %v1919_v57 = vsel %vm795_vm5, %v1918_v42, %v1901_v17  ;;  %v1873_v17 = vperm.slane %v1865_v7, %v3465_v51  ;;  %v1876_v52 = vrot.slane %v1857_v33, 4 }
 0xa7c   : > { %v1925_v60 = vperm.slane %v1919_v57, %v3465_v51  ;;  %v1944_v61 = vrot.slane %v1929_v54, 4  ;;  %v1946_v62 = vrot.slane %v1937_v55, 4  ;;  %v1949_v63 = vsel %vm795_vm5, 0.0, %v1948_v56 }
 0xa7d   : > { %v1961_v0 = vsel %vm795_vm5, %v1948_v56, %v1937_v55  ;;  %v1966_v20 = vrot.slane %v1949_v63, 4  ;;  %v1878_v38 = vrot.slane %v1873_v17, 4  ;;  %v1875_v58 = vsel %vm795_vm5, %v1874_v43, %v1857_v33 }
 0xa7e   : > { %v1942_v21 = vrot.slane %v1925_v60, 4  ;;  %v1945_v3 = vsel %vm795_vm5, 0.0, %v1944_v61  ;;  %v1947_v4 = vsel %vm795_vm5, 0.0, %v1946_v62  ;;  %v1950_v45 = vsel %vm795_vm5, %v1944_v61, %v1925_v60 }
 0xa7f   : > { %v1955_v5 = vrot.slane %v1945_v3, 4  ;;  %v1965_v48 = vperm.slane %v1961_v0, %v3458_v44  ;;  %v1967_v28 = vsel %vm795_vm5, %v1966_v20, %v1947_v4  ;;  %v1954_v47 = vperm.slane %v1950_v45, %v3458_v44 }
 0xa80   : > { %v1943_v6 = vsel %vm795_vm5, 0.0, %v1942_v21  ;;  %v1971_v46 = vperm.slane %v1967_v28, %v3458_v44  ;;  %v1879_v56 = vsel %vm795_vm5, %v1878_v38, %v1861_v53  ;;  %v1877_v59 = vsel %vm795_vm5, %v1869_v19, %v1876_v52 }
 0xa81   : > { %v1986_v10 = vrot.slane %v1965_v48, 4  ;;  %v1956_v11 = vsel %vm795_vm5, %v1955_v5, %v1943_v6  ;;  %v1974_v12 = vrot.slane %v1954_v47, 4  ;;  %v1880_v60 = vrot.slane %v1861_v53, 4 }
 0xa82   : > { %v1960_v13 = vperm.slane %v1956_v11, %v3458_v44  ;;  %v1984_v14 = vrot.slane %v1971_v46, 4  ;;  %v3178_v28 = vpack.i.bf16 %v3784_v31, %v3780_v29 }
 0xa83   : > { %v1987_v16 = vsel %vm795_vm5, %v1971_v46, %v1986_v10  ;;  %v1881_v61 = vsel %vm795_vm5, %v1873_v17, %v1880_v60 }
 0xa84   : > { %v1975_v34 = vsel %vm795_vm5, %v1960_v13, %v1974_v12  ;;  %v1995_v40 = vperm.slane %v1987_v16, %v3465_v51  ;;  %v1972_v36 = vrot.slane %v1960_v13, 4  ;;  %v1985_v30 = vsel %vm795_vm5, %v1984_v14, %v1965_v48 }
 0xa85   : > { %v1983_v50 = vperm.slane %v1975_v34, %v3465_v51  ;;  %v1991_v23 = vperm.slane %v1985_v30, %v3465_v51 }
 0xa86   : > { %v2000_v24 = vrot.slane %v1995_v40, 4  ;;  %v1973_v25 = vsel %vm795_vm5, %v1972_v36, %v1954_v47  ;;  %v3173_v47 = vpack.i.bf16 %v3786_v32, %v3770_v26 }
 0xa87   : > { %v1979_v35 = vperm.slane %v1973_v25, %v3465_v51  ;;  %v1996_v37 = vrot.slane %v1991_v23, 4  ;;  %v2002_v41 = vrot.slane %v1983_v50, 4 }
 0xa88   : > { %v2001_v42 = vsel %vm795_vm5, %v2000_v24, %v1983_v50 }
 0xa89   : > { %3043 = vmatpush.xpose.msk.msrb.mxu2 %vm1152_vm6, %v2001_v42  ;;  %v1997_v49 = vsel %vm795_vm5, %v1996_v37, %v1979_v35  ;;  %v2003_v54 = vsel %vm795_vm5, %v1995_v40, %v2002_v41  ;;  %v1998_v55 = vrot.slane %v1979_v35, 4 }
 0xa8a   : > { %3039 = vmatpush.xpose.msk.msrb.mxu3 %vm1152_vm6, %v1997_v49 }
 0xa8b   : > { %v1999_v57 = vsel %vm795_vm5, %v1991_v23, %v1998_v55 }
 0xa8c   : > { %3044 = vmatmul.msk.f32.vlgmr.msrb.gmra.mxu2 %vm1152_vm6, %v1879_v56  ;;  %3041 = vmatpush.xpose.msk.msrb.mxu0 %vm1152_vm6, %v1999_v57 }
 0xa8d   : > { %3040 = vmatmul.msk.f32.vlgmr.msrb.gmra.mxu3 %vm1152_vm6, %v1875_v58 }
 0xa8e   : > { %3045 = vmatpush.xpose.msk.msra.mxu3 %vm1152_vm6, %v2003_v54 }
 0xa8f   : > { %3042 = vmatmul.msk.f32.vlgmr.msrb.gmra.mxu0 %vm1152_vm6, %v1877_v59 }
 0xa95   : > { %3046 = vmatmul.msk.f32.vlgmr.msra.gmra.mxu3 %vm1152_vm6, %v1881_v61 }
 0xb0c   : > { %v2175_v2 = vpop.f32.mrf.mxu0 }
 0xb0d   : > { %v2176_v3 = vadd.f32 %v3573_v39, %v2175_v2 }
 0xb0f   : > { %v2201_v62 = vpop.f32.mrf.mxu2  ;;  %v2233_v5 = vsel %vm1152_vm6, %v2176_v3, -inf }
 0xb10   : > { %v2202_v63 = vadd.f32 %v3573_v39, %v2201_v62  ;;  %v2149_v0 = vpop.f32.mrf.mxu3 }
 0xb11   : > { %v2150_v20 = vadd.f32 %v3573_v39, %v2149_v0 }
 0xb12   : > { %v2236_v1 = vsel %vm1152_vm6, %v2202_v63, -inf }
 0xb13   : > { %2237 = vmax.xlane.f32.xlu2 %v2236_v1  ;;  %v2230_v21 = vsel %vm1152_vm6, %v2150_v20, -inf }
 0xb14   : > { %2231 = vmax.xlane.f32.xlu0 %v2230_v21 }
 0xb18   : > { %v2227_v4 = vpop.f32.mrf.mxu3 }
 0xb19   : > { %v2228_v45 = vadd.f32 %v3573_v39, %v2227_v4 }
 0xb1b   : > { %2234 = vmax.xlane.f32.xlu2 %v2233_v5  ;;  %v2239_v48 = vsel %vm1152_vm6, %v2228_v45, -inf }
 0xb1c   : > { %2240 = vmax.xlane.f32.xlu1 %v2239_v48 }
 0xb28   : > { %3179 = vrot.lane.b32.xlu0 %v3178_v28, %s4161_s27 }
 0xb35   : > { %3174 = vrot.lane.b32.xlu1 %v3173_v47, %s4161_s27  ;;  %s4087_s27 = sshll.u32 %s4168_s25, 2 }
 0xb36   : > { %s703_s0 = scalar_lea.vmem %s4134_s21, %s4087_s27  ;;  %s699_s29 = scalar_lea.vmem %s4133_s20, %s4087_s27 }
 0xb86   : > { %v2238_v6 = vpop.xlane.xlu2 %2237 }
 0xb87   : > { %v2244_v46 = vsub.f32 %v2202_v63, %v2238_v6  ;;  %v2232_v9 = vpop.xlane.xlu0 %2231 }
 0xb88   : > { %v2242_v29 = vsub.f32 %v2150_v20, %v2232_v9 }
 0xb89   : > { %v2250_v7 = vmul.f32 1.442695, %v2244_v46 }
 0xb8a   : > { %v2246_v26 = vmul.f32 1.442695, %v2242_v29 }
 0xb8b   : > { %3232 = vpow2.f32 %v2250_v7 }
 0xb8e   : > { %v2235_v39 = vpop.xlane.xlu2 %2234 }
 0xb8f   : > { %v2243_v10 = vsub.f32 %v2176_v3, %v2235_v39  ;;  %v2241_v11 = vpop.xlane.xlu1 %2240 }
 0xb90   : > { %v2245_v12 = vsub.f32 %v2228_v45, %v2241_v11 }
 0xb91   : > { %v3902_v13 = vpop.eup %3232  ;;  %v2248_v14 = vmul.f32 1.442695, %v2243_v10 }
 0xb92   : > { %v2252_v31 = vmul.f32 1.442695, %v2245_v12  ;;  %v2260_v15 = vsel %vm1152_vm6, %v3902_v13, 0.0 }
 0xb93   : > { %3234 = vpow2.f32 %v2248_v14  ;;  %2261 = vadd.xlane.f32.xlu2 %v2260_v15 }
 0xb94   : > { %3236 = vpow2.f32 %v2252_v31 }
 0xb95   : > { %3238 = vpow2.f32 %v2246_v26 }
 0xb99   : > { %v3906_v32 = vpop.eup %3234 }
 0xb9a   : > { %v3908_v16 = vpop.eup %3236  ;;  %v2257_v17 = vsel %vm1152_vm6, %v3906_v32, 0.0  ;;  %v3180_v34 = vpop.permute.xlu0 %3179 }
 0xb9b   : > { %2258 = vadd.xlane.f32.xlu0 %v2257_v17  ;;  %v2263_v18 = vsel %vm1152_vm6, %v3908_v16, 0.0  ;;  %v3914_v19 = vpop.eup %3238  ;;  %v3182_v36 = vunpack.i.h.bf16 %v3180_v34  ;;  %v3181_v30 = vunpack.i.l.bf16 %v3180_v34 }
 0xb9c   : > { %2264 = vadd.xlane.f32.xlu2 %v2263_v18  ;;  %v2254_v40 = vsel %vm1152_vm6, %v3914_v19, 0.0 }
 0xb9d   : > { %v2028_v23 = vrot.slane %v3182_v36, 4  ;;  %v2016_v24 = vrot.slane %v3181_v30, 4 }
 0xba4   : > { %2255 = vadd.xlane.f32.xlu2 %v2254_v40 }
 0xba7   : > { %v3175_v50 = vpop.permute.xlu1 %3174 }
 0xba8   : > { %v3177_v25 = vunpack.i.h.bf16 %v3175_v50  ;;  %v3176_v27 = vunpack.i.l.bf16 %v3175_v50 }
 0xbaa   : > { %v2030_v33 = vrot.slane %v3177_v25, 4  ;;  %v2017_v35 = vsel %vm795_vm5, %v2016_v24, %v3176_v27  ;;  %v2018_v37 = vrot.slane %v3176_v27, 4  ;;  %v2029_v38 = vsel %vm795_vm5, %v2028_v23, %v3177_v25 }
 0xbab   : > { %v2023_v41 = vperm.slane %v2017_v35, %v3458_v44  ;;  %v2035_v42 = vperm.slane %v2029_v38, %v3458_v44 }
 0xbac   : > { %v2019_v43 = vsel %vm795_vm5, %v3181_v30, %v2018_v37  ;;  %v2031_v49 = vsel %vm795_vm5, %v3182_v36, %v2030_v33 }
 0xbad   : > { %v2027_v53 = vperm.slane %v2019_v43, %v3458_v44  ;;  %v2039_v54 = vperm.slane %v2031_v49, %v3458_v44  ;;  %v2040_v55 = vrot.slane %v2035_v42, 4  ;;  %v2042_v52 = vrot.slane %v2023_v41, 4 }
 0xbaf   : > { %v2041_v56 = vsel %vm795_vm5, %v2040_v55, %v2023_v41  ;;  %v2043_v57 = vsel %vm795_vm5, %v2035_v42, %v2042_v52  ;;  %v2052_v58 = vrot.slane %v2039_v54, 4  ;;  %v2054_v59 = vrot.slane %v2027_v53, 4 }
 0xbb0   : > { %v2047_v60 = vperm.slane %v2041_v56, %v3465_v51  ;;  %v2051_v61 = vperm.slane %v2043_v57, %v3465_v51 }
 0xbb1   : > { %v2053_v62 = vsel %vm795_vm5, %v2052_v58, %v2027_v53  ;;  %v2055_v63 = vsel %vm795_vm5, %v2039_v54, %v2054_v59 }
 0xbb2   : > { %v2059_v0 = vperm.slane %v2053_v62, %v3465_v51  ;;  %v2063_v20 = vperm.slane %v2055_v63, %v3465_v51  ;;  %v2064_v1 = vrot.slane %v2047_v60, 4  ;;  %v2066_v2 = vrot.slane %v2051_v61, 4 }
 0xbb4   : > { %v2067_v21 = vsel %vm795_vm5, 0.0, %v2066_v2  ;;  %v2068_v3 = vrot.slane %v2059_v0, 4  ;;  %v2070_v4 = vrot.slane %v2063_v20, 4  ;;  %v2072_v45 = vsel %vm795_vm5, %v2066_v2, %v2047_v60 }
 0xbb5   : > { %v2077_v5 = vrot.slane %v2067_v21, 4  ;;  %v2065_v48 = vsel %vm795_vm5, 0.0, %v2064_v1  ;;  %v2076_v47 = vperm.slane %v2072_v45, %v3458_v44 }
 0xbb6   : > { %v2071_v28 = vsel %vm795_vm5, 0.0, %v2070_v4  ;;  %v2083_v6 = vsel %vm795_vm5, %v2070_v4, %v2059_v0  ;;  %v2069_v9 = vsel %vm795_vm5, 0.0, %v2068_v3 }
 0xbb7   : > { %v2088_v46 = vrot.slane %v2071_v28, 4  ;;  %v2078_v7 = vsel %vm795_vm5, %v2077_v5, %v2065_v48  ;;  %v2087_v39 = vperm.slane %v2083_v6, %v3458_v44  ;;  %v2096_v11 = vrot.slane %v2076_v47, 4 }
 0xbb8   : > { %v2082_v10 = vperm.slane %v2078_v7, %v3458_v44 }
 0xbb9   : > { %v2089_v12 = vsel %vm795_vm5, %v2088_v46, %v2069_v9  ;;  %v2108_v14 = vrot.slane %v2087_v39, 4 }
 0xbba   : > { %v2093_v29 = vperm.slane %v2089_v12, %v3458_v44  ;;  %v2097_v31 = vsel %vm795_vm5, %v2082_v10, %v2096_v11  ;;  %v2094_v15 = vrot.slane %v2082_v10, 4 }
 0xbbb   : > { %v2105_v26 = vperm.slane %v2097_v31, %v3465_v51 }
 0xbbc   : > { %v2109_v17 = vsel %vm795_vm5, %v2093_v29, %v2108_v14  ;;  %v2095_v18 = vsel %vm795_vm5, %v2094_v15, %v2076_v47  ;;  %v2106_v34 = vrot.slane %v2093_v29, 4 }
 0xbbd   : > { %v2117_v40 = vperm.slane %v2109_v17, %v3465_v51  ;;  %v2124_v36 = vrot.slane %v2105_v26, 4  ;;  %v2101_v30 = vperm.slane %v2095_v18, %v3465_v51 }
 0xbbe   : > { %v2107_v50 = vsel %vm795_vm5, %v2106_v34, %v2087_v39 }
 0xbbf   : > { %v2125_v23 = vsel %vm795_vm5, %v2117_v40, %v2124_v36  ;;  %v2113_v24 = vperm.slane %v2107_v50, %v3465_v51  ;;  %v2120_v25 = vrot.slane %v2101_v30, 4  ;;  %v2122_v27 = vrot.slane %v2117_v40, 4 }
 0xbc0   : > { %2361 = vmatpush.msrb.mxu3 %v2125_v23 }
 0xbc1   : > { %v2121_v33 = vsel %vm795_vm5, %v2113_v24, %v2120_v25  ;;  %v2123_v35 = vsel %vm795_vm5, %v2122_v27, %v2105_v26  ;;  %v2118_v37 = vrot.slane %v2113_v24, 4 }
 0xbc2   : > { %2315 = vmatpush.msra.mxu1 %v2121_v33  ;;  %2338 = vmatpush.msra.mxu2 %v2123_v35 }
 0xbc3   : > { %v2119_v38 = vsel %vm795_vm5, %v2118_v37, %v2101_v30 }
 0xbc4   : > { %2292 = vmatpush.msra.mxu0 %v2119_v38 }
 0xc06   : > { %v2262_v41 = vpop.xlane.xlu2 %2261 }
 0xc07   : > { %3240 = vrcp.f32 %v2262_v41 }
 0xc0d   : > { %v3241_v42 = vpop.eup %3240 }
 0xc0e   : > { %v2272_v43 = vmul.f32 %v3241_v42, %v3902_v13  ;;  %v2259_v49 = vpop.xlane.xlu0 %2258 }
 0xc0f   : > { %3242 = vrcp.f32 %v2259_v49  ;;  %v2265_v53 = vpop.xlane.xlu2 %2264 }
 0xc10   : > { %3244 = vrcp.f32 %v2265_v53  ;;  %3049 = vmatmul.msk.f32.vlgmr.msra.gmra.mxu2 %vm1152_vm6, %v2272_v43 }
 0xc15   : > { %v3243_v54 = vpop.eup %3242 }
 0xc16   : > { %v3245_v55 = vpop.eup %3244  ;;  %v2271_v52 = vmul.f32 %v3243_v54, %v3906_v32 }
 0xc17   : > { %v2273_v56 = vmul.f32 %v3245_v55, %v3908_v16  ;;  %v2256_v57 = vpop.xlane.xlu2 %2255 }
 0xc18   : > { %3246 = vrcp.f32 %v2256_v57  ;;  %3048 = vmatmul.msk.f32.vlgmr.msra.gmra.mxu1 %vm1152_vm6, %v2271_v52 }
 0xc19   : > { %3050 = vmatmul.msk.f32.vlgmr.msrb.gmra.mxu3 %vm1152_vm6, %v2273_v56 }
 0xc1e   : > { %v3247_v58 = vpop.eup %3246 }
 0xc1f   : > { %v2270_v13 = vmul.f32 %v3247_v58, %v3914_v19 }
 0xc21   : > { %3047 = vmatmul.msk.f32.vlgmr.msra.gmra.mxu0 %vm1152_vm6, %v2270_v13 }
 0xc93   : > { %v2340_v60 = vpop.f32.mrf.mxu2 }
 0xc94   : > { %v2366_v63 = vrot.slane %v2340_v60, 4 }
 0xc95   : > { %v2317_v59 = vpop.f32.mrf.mxu1 }
 0xc96   : > { %v2380_v61 = vrot.slane %v2317_v59, 4 }
 0xc9c   : > { %v2363_v62 = vpop.f32.mrf.mxu3 }
 0xc9d   : > { %v2378_v0 = vrot.slane %v2363_v62, 4  ;;  %v2381_v32 = vsel %vm795_vm5, %v2363_v62, %v2380_v61 }
 0xc9e   : > { %v2389_v16 = vperm.slane %v2381_v32, %v3458_v44  ;;  %v2294_v20 = vpop.f32.mrf.mxu0 }
 0xc9f   : > { %v2379_v1 = vsel %vm795_vm5, %v2378_v0, %v2317_v59  ;;  %v2367_v2 = vsel %vm795_vm5, %v2366_v63, %v2294_v20  ;;  %v2368_v21 = vrot.slane %v2294_v20, 4  ;;  %v3133_v0 = vld [vmem:[%s4120_s7 + $0x10] sm:$0xff] }
 0xca0   : > { %v2385_v19 = vperm.slane %v2379_v1, %v3458_v44  ;;  %v2373_v3 = vperm.slane %v2367_v2, %v3458_v44  ;;  %v2402_v5 = vrot.slane %v2389_v16, 4 }
 0xca1   : > { %v2369_v4 = vsel %vm795_vm5, %v2340_v60, %v2368_v21 }
 0xca2   : > { %v2390_v45 = vrot.slane %v2385_v19, 4  ;;  %v2377_v48 = vperm.slane %v2369_v4, %v3458_v44  ;;  %v2392_v28 = vrot.slane %v2373_v3, 4 }
 0xca4   : > { %v2391_v47 = vsel %vm795_vm5, %v2390_v45, %v2373_v3  ;;  %v2393_v6 = vsel %vm795_vm5, %v2385_v19, %v2392_v28  ;;  %v2403_v46 = vsel %vm795_vm5, %v2402_v5, %v2377_v48  ;;  %v2404_v7 = vrot.slane %v2377_v48, 4  ;;  %v3198_v3 = vld [vmem:[%s4121_s8 + $0x1] ss:$0 sm:$0xff] }
 0xca5   : > { %v2397_v39 = vperm.slane %v2391_v47, %v3465_v51  ;;  %v2401_v9 = vperm.slane %v2393_v6, %v3465_v51  ;;  %v2409_v10 = vperm.slane %v2403_v46, %v3465_v51 }
 0xca6   : > { %v2405_v11 = vsel %vm795_vm5, %v2389_v16, %v2404_v7 }
 0xca7   : > { %v2413_v12 = vperm.slane %v2405_v11, %v3465_v51  ;;  %v2414_v14 = vrot.slane %v2397_v39, 4  ;;  %v2416_v29 = vrot.slane %v2401_v9, 4  ;;  %v2418_v15 = vrot.slane %v2409_v10, 4  ;;  %v3136_v9 = vld [vmem:[%s4124_s11 + $0x18] sm:$0xff] }
 0xca8   : > { %2597 = vmatpush.bf16.msrb.mxu1 %v3136_v9 }
 0xca9   : > { %v2417_v31 = vsel %vm795_vm5, 0.0, %v2416_v29  ;;  %v2420_v26 = vrot.slane %v2413_v12, 4  ;;  %v2422_v17 = vsel %vm795_vm5, %v2416_v29, %v2397_v39  ;;  %v2415_v34 = vsel %vm795_vm5, 0.0, %v2414_v14 }
 0xcaa   : > { %v2427_v18 = vrot.slane %v2417_v31, 4  ;;  %v2426_v36 = vperm.slane %v2422_v17, %v3458_v44  ;;  %v2419_v25 = vsel %vm795_vm5, 0.0, %v2418_v15 }
 0xcab   : > { %v2421_v40 = vsel %vm795_vm5, 0.0, %v2420_v26  ;;  %v2433_v30 = vsel %vm795_vm5, %v2420_v26, %v2409_v10 }
 0xcac   : > { %v2438_v50 = vrot.slane %v2421_v40, 4  ;;  %v2428_v23 = vsel %vm795_vm5, %v2427_v18, %v2415_v34  ;;  %v2437_v24 = vperm.slane %v2433_v30, %v3458_v44  ;;  %v2446_v33 = vrot.slane %v2426_v36, 4  ;;  %v3199_v18 = vld [vmem:[%s4122_s9 + $0x1] ss:$0 sm:$0xff] }
 0xcad   : > { %v2432_v27 = vperm.slane %v2428_v23, %v3458_v44  ;;  %v3200_v40 = vld [vmem:[%s4123_s10 + $0x1] ss:$0 sm:$0xff] }
 0xcae   : > { %v2439_v35 = vsel %vm795_vm5, %v2438_v50, %v2419_v25  ;;  %v2458_v37 = vrot.slane %v2437_v24, 4  ;;  %v3139_v25 = vld [vmem:[%s4126_s13 + $0x30] sm:$0xff] }
 0xcaf   : > { %v2443_v38 = vperm.slane %v2439_v35, %v3458_v44  ;;  %v2444_v41 = vrot.slane %v2432_v27, 4  ;;  %v2447_v42 = vsel %vm795_vm5, %v2432_v27, %v2446_v33  ;;  %v3138_v27 = vld [vmem:[%s4126_s13 + $0x28] sm:$0xff]  ;;  %v3137_v33 = vld [vmem:[%s4126_s13 + $0x20] sm:$0xff] }
 0xcb0   : > { %v2455_v56 = vperm.slane %v2447_v42, %v3465_v51  ;;  %v3201_v35 = vld [vmem:[%s4125_s12 + $0x1] ss:$0 sm:$0xff] }
 0xcb1   : > { %v2459_v43 = vsel %vm795_vm5, %v2443_v38, %v2458_v37  ;;  %v2445_v49 = vsel %vm795_vm5, %v2444_v41, %v2426_v36  ;;  %v2456_v53 = vrot.slane %v2443_v38, 4 }
 0xcb2   : > { %v2467_v54 = vperm.slane %v2459_v43, %v3465_v51  ;;  %v2451_v55 = vperm.slane %v2445_v49, %v3465_v51  ;;  %v2474_v62 = vrot.slane %v2455_v56, 4 }
 0xcb3   : > { %v2457_v52 = vsel %vm795_vm5, %v2456_v53, %v2437_v24  ;;  %v3140_v24 = vld [vmem:[%s4126_s13 + $0x38] sm:$0xff] }
 0xcb4   : > { %v2472_v57 = vrot.slane %v2467_v54, 4  ;;  %v2463_v58 = vperm.slane %v2457_v52, %v3465_v51  ;;  %v2470_v44 = vrot.slane %v2451_v55, 4  ;;  %v2475_v63 = vsel %vm795_vm5, %v2467_v54, %v2474_v62  ;;  %v3134_v51 = vld [vmem:[%s4120_s7 + $0x18] sm:$0xff]  ;;  %2659 = vmatpush.bf16.msrb.mxu2 %v3140_v24 }
 0xcb5   : > { %2523 = vmatpush.bf16.msrb.mxu0 %v3134_v51 }
 0xcb6   : > { %v2473_v13 = vsel %vm795_vm5, %v2472_v57, %v2455_v56  ;;  %v2468_v59 = vrot.slane %v2463_v58, 4  ;;  %v2471_v60 = vsel %vm795_vm5, %v2463_v58, %v2470_v44  ;;  %v3202_v44 = vld [vmem:[%s4127_s14 + $0x1] ss:$0 sm:$0xff] }
 0xcb7   : > { %2481 = vrot.lane.b32.xlu2 %v2473_v13, %s4162_s24  ;;  %2477 = vrot.lane.b32.xlu1 %v2471_v60, %s4163_s26 }
 0xcb8   : > { %v2469_v61 = vsel %vm795_vm5, %v2468_v59, %v2451_v55  ;;  %2660 = vmatpush.bf16.msrb.mxu2 %v3139_v25 }
 0xcb9   : > { %2524 = vmatpush.bf16.msrb.mxu0 %v3133_v0 }
 0xcbc   : > { %2661 = vmatpush.bf16.msrb.mxu2 %v3138_v27 }
 0xcbf   : > { %2485 = vrot.lane.b32.xlu1 %v2475_v63, %s4164_s22  ;;  %s4166_s22 = sld [smem:[#allocation4_spill]] }
 0xcc0   : > { %2662 = vmatpush.bf16.msrb.mxu2 %v3137_v33 }
 0xcc5   : > { %s691_s30 = scalar_lea.vmem %s4166_s22, %s4087_s27 }
 0xd11   : > { %v2482_v20 = vpop.permute.xlu2 %2481 }
 0xd29   : > { %v2478_v32 = vpop.permute.xlu1 %2477 }
 0xd2a   : > { %v2488_v16 = vsel %vm1152_vm6, %v2469_v61, %v2478_v32 }
 0xd2b   : > { %v2489_v2 = vsel %vm1516_vm7, %v2488_v16, %v2482_v20  ;;  %v3142_v20 = vld [vmem:[%s4130_s17 + $0x8] sm:$0xff]  ;;  %vm2740_vm7 = vcmask 31744  }
 0xd2c   : > { %2733 = vmatpush.bf16.msra.mxu3 %v3142_v20 }
 0xd31   : > { %v2486_v1 = vpop.permute.xlu1 %2485 }
 0xd32   : > { %v2490_v21 = vsel %vm1518_vm8, %v2489_v2, %v2486_v1  ;;  %v3141_v1 = vld [vmem:[%s4130_s17] sm:$0xff] }
 0xd33   : > { %v2496_v19 = vpack.c.bf16 %v2490_v21, %v2490_v21  ;;  %2734 = vmatpush.bf16.msra.mxu3 %v3141_v1 }
 0xd35   : > { %3064 = vmatmul.msk.bf16.vlgmr.msrb.gmra.mxu0 %vm708_vm0, %v2496_v19 }
 0xdb2   : > { %v2526_v4 = vpop.f32.mrf.mxu0 }
 0xdb3   : > { %v2527_v45 = vadd.f32 %v3198_v3, %v2526_v4 }
 0xdb5   : > { %v2530_v5 = vadd.f32 %v2527_v45, %v3762_v22  ;;  %v3135_v22 = vld [vmem:[%s4124_s11 + $0x10] sm:$0xff] }
 0xdb6   : > { %2598 = vmatpush.bf16.msrb.mxu1 %v3135_v22  ;;  %v3205_v22 = vld [vmem:[%s4131_s18] ss:$0 sm:$0xff] }
 0xdb7   : > { %v2535_v48 = vsel %vm708_vm0, %v2530_v5, 0.0 }
 0xdb8   : > { %2536 = vadd.xlane.f32.xlu1 %v2535_v48 }
 0xdba   : > { %v2528_v28 = vpop.f32.mrf.mxu0 }
 0xe2b   : > { %v2537_v47 = vpop.xlane.xlu1 %2536 }
 0xe2c   : > { %v2538_v6 = vmul.f32 %v2537_v47, %v3409_v8  ;;  %v3203_v47 = vld [vmem:[%s4128_s15 + $0x1] ss:$0 sm:$0xff] }
 0xe2e   : > { %v2539_v46 = vsub.f32 %v2530_v5, %v2538_v6 }
 0xe30   : > { %v2540_v7 = vmul.f32 %v2539_v46, %v2539_v46 }
 0xe32   : > { %v2541_v39 = vsel %vm708_vm0, %v2540_v7, 0.0 }
 0xe33   : > { %2542 = vadd.xlane.f32.xlu2 %v2541_v39 }
 0xea6   : > { %v2543_v10 = vpop.xlane.xlu2 %2542 }
 0xea7   : > { %v2544_v11 = vmul.f32 %v2543_v10, %v3409_v8 }
 0xea9   : > { %v2545_v12 = vadd.f32 1e-12, %v2544_v11 }
 0xeab   : > { %3248 = vrsqrt.f32 %v2545_v12  ;;  %vm2552_vm2 = vweird.f32 %v2545_v12 }
 0xeb1   : > { %v3249_v14 = vpop.eup %3248 }
 0xeb2   : > { %v2547_v29 = vmul.f32 %v3249_v14, %v2545_v12  ;;  %vm2553_vm1 = vweird.f32 %v3249_v14 }
 0xeb3   : > { %vm2554_vm3 = vmor %vm2552_vm2, %vm2553_vm1 }
 0xeb4   : > { %v2548_v31 = vmul.f32 %v3249_v14, %v2547_v29  ;;  %v2758_v29 = vlaneseq }
 0xeb6   : > { %v2549_v15 = vmul.f32 0.5, %v2548_v31  ;;  %v2755_v31 = vld [vmem:[%s691_s30] sm:$0x7]  ;;  %v2759_v27 = vand.u32 127, %v2758_v29 }
 0xeb8   : > { %v2550_v26 = vsub.f32 1.5, %v2549_v15  ;;  %v2762_v15 = vshrl.u32 %v2758_v29, 7 }
 0xeba   : > { %v2551_v17 = vmul.f32 %v3249_v14, %v2550_v26  ;;  %3183 = vset.pattern.permute.xlu0 %v2762_v15  ;;  %3184 = vset.pattern.permute.xlu1 %v2762_v15 }
 0xebb   : > { %3185 = vset.pattern.permute.xlu2 %v2762_v15 }
 0xebc   : > { %v2555_v34 = vsel %vm2554_vm3, %v3249_v14, %v2551_v17 }
 0xebd   : > { %v2556_v36 = vmul.f32 %v2555_v34, %v2539_v46 }
 0xebf   : > { %v2560_v30 = vmul.f32 %v3199_v18, %v2556_v36 }
 0xec1   : > { %v2564_v50 = vadd.f32 %v3200_v40, %v2560_v30 }
 0xec3   : > { %v2570_v23 = vpack.c.bf16 %v2564_v50, %v2564_v50 }
 0xec5   : > { %3080 = vmatmul.msk.bf16.vlgmr.msrb.gmra.mxu1 %vm708_vm0, %v2570_v23 }
 0xf42   : > { %v2600_v37 = vpop.f32.mrf.mxu1 }
 0xf43   : > { %v2601_v38 = vadd.f32 %v3201_v35, %v2600_v37 }
 0xf45   : > { %v2604_v41 = vmul.f32 %v2601_v38, %v2601_v38 }
 0xf47   : > { %v2605_v42 = vmul.f32 %v2604_v41, %v2601_v38 }
 0xf49   : > { %v2606_v43 = vmul.f32 0.044715, %v2605_v42 }
 0xf4a   : > { %v2602_v49 = vpop.f32.mrf.mxu1 }
 0xf4b   : > { %v2607_v53 = vadd.f32 %v2606_v43, %v2601_v38 }
 0xf4d   : > { %v2608_v54 = vmul.f32 0.7978846, %v2607_v53 }
 0xf4f   : > { %3250 = vtanh.f32 %v2608_v54 }
 0xf55   : > { %v3251_v55 = vpop.eup %3250 }
 0xf56   : > { %v2610_v52 = vadd.f32 1.0, %v3251_v55 }
 0xf58   : > { %v2611_v56 = vmul.f32 0.5, %v2610_v52 }
 0xf5a   : > { %v2612_v57 = vmul.f32 %v2611_v56, %v2601_v38  ;;  %v3277_v56 = vmov 0.0  }
 0xf5c   : > { %v2622_v58 = vpack.c.bf16 %v2612_v57, %v2612_v57 }
 0xf5e   : > { %3106 = vmatmul.msk.bf16.vlgmr.msrb.gmra.mxu2 %vm1673_vm12, %v2622_v58  ;;  %vm2805_vm12 = vcmask 1041409  }
 0xfe1   : > { %v2664_v13 = vpop.f32.mrf.mxu2 }
 0xfe2   : > { %v2665_v59 = vadd.f32 %v3202_v44, %v2664_v13 }
 0xfe4   : > { %v2668_v60 = vadd.f32 %v2665_v59, %v2564_v50 }
 0xfe6   : > { %v2673_v61 = vsel %vm708_vm0, %v2668_v60, 0.0 }
 0xfe7   : > { %2674 = vadd.xlane.f32.xlu0 %v2673_v61 }
 0xfe9   : > { %v2666_v62 = vpop.f32.mrf.mxu2 }
0x105a   : > { %v2675_v63 = vpop.xlane.xlu0 %2674 }
0x105b   : > { %v2676_v51 = vmul.f32 %v2675_v63, %v3409_v8 }
0x105d   : > { %v2677_v0 = vsub.f32 %v2668_v60, %v2676_v51 }
0x105f   : > { %v2678_v32 = vmul.f32 %v2677_v0, %v2677_v0 }
0x1061   : > { %v2679_v16 = vsel %vm708_vm0, %v2678_v32, 0.0 }
0x1062   : > { %2680 = vadd.xlane.f32.xlu0 %v2679_v16 }
0x10d5   : > { %v2681_v2 = vpop.xlane.xlu0 %2680 }
0x10d6   : > { %v2682_v21 = vmul.f32 %v2681_v2, %v3409_v8  ;;  %v3204_v8 = vld [vmem:[%s4129_s16 + $0x1] ss:$0 sm:$0xff] }
0x10d8   : > { %v2683_v19 = vadd.f32 1e-12, %v2682_v21 }
0x10da   : > { %3252 = vrsqrt.f32 %v2683_v19  ;;  %vm2690_vm5 = vweird.f32 %v2683_v19 }
0x10e0   : > { %v3253_v3 = vpop.eup %3252 }
0x10e1   : > { %v2685_v4 = vmul.f32 %v3253_v3, %v2683_v19  ;;  %vm2691_vm4 = vweird.f32 %v3253_v3 }
0x10e2   : > { %vm2692_vm6 = vmor %vm2690_vm5, %vm2691_vm4 }
0x10e3   : > { %v2686_v45 = vmul.f32 %v3253_v3, %v2685_v4 }
0x10e5   : > { %v2687_v5 = vmul.f32 0.5, %v2686_v45 }
0x10e7   : > { %v2688_v48 = vsub.f32 1.5, %v2687_v5 }
0x10e9   : > { %v2689_v28 = vmul.f32 %v3253_v3, %v2688_v48 }
0x10eb   : > { %v2693_v6 = vsel %vm2692_vm6, %v3253_v3, %v2689_v28 }
0x10ec   : > { %v2694_v46 = vmul.f32 %v2693_v6, %v2677_v0 }
0x10ee   : > { %v2698_v7 = vmul.f32 %v3203_v47, %v2694_v46 }
0x10f0   : > { %v2702_v39 = vadd.f32 %v3204_v8, %v2698_v7 }
0x10f2   : > { %v2707_v9 = vpack.c.bf16 %v2702_v39, %v2702_v39 }
0x10f4   : > { %3117 = vmatmul.msk.bf16.vlgmr.msra.gmra.mxu3 %vm708_vm0, %v2707_v9  ;;  %vm2756_vm0 = vcmp.ge.s32.totalorder %v2755_v31, 0 }
0x10f5   : > { %v2757_v26 = vsel %vm2756_vm0, %v2755_v31, 0  ;;  %v3118_v57 = vsel %vm2756_vm0, 1.0, %v3277_v56 }
0x10f6   : > { %v2760_v17 = vperm.slane %v2757_v26, 0  ;;  %v2774_v36 = vperm.slane %v2757_v26, 2  ;;  %v2767_v23 = vperm.slane %v2757_v26, 1  ;;  %v2819_v58 = vsel %vm2811_vm11, %v3118_v57, 0.0 }
0x10f8   : > { %2779 = vperm.xlu2 %3185, %v2774_v36  }
0x1152   : > { %v2780_v37 = vpop.permute.xlu2 %2779 }
0x1153   : > { %vm2783_vm9 = vcmp.eq.s32.totalorder %v2759_v27, %v2780_v37 }
0x1177   : > { %v2736_v10 = vpop.f32.mrf.mxu3 }
0x1178   : > { %v2737_v11 = vadd.f32 %v3205_v22, %v2736_v10 }
0x117a   : > { %2741 = vst.msk [vmem:[%s695_s23] sm:$0xff] %vm2740_vm7, %v2737_v11  ;;  %v2742_v12 = vsel %vm2740_vm7, %v2737_v11, -inf }
0x117b   : > { %2743 = vmax.xlane.f32.xlu0 %v2742_v12 }
0x117f   : > { %v2738_v14 = vpop.f32.mrf.mxu3 }
0x118f   : > { %2765 = vperm.xlu0 %3183, %v2760_v17  }
0x11ee   : > { %v2744_v18 = vpop.xlane.xlu0 %2743 }
0x11ef   : > { %v2745_v34 = vsub.f32 %v2737_v11, %v2744_v18 }
0x11f1   : > { %v2746_v40 = vmul.f32 1.442695, %v2745_v34 }
0x11f3   : > { %3254 = vpow2.f32 %v2746_v40 }
0x11f9   : > { %v3255_v30 = vpop.eup %3254 }
0x11fa   : > { %v2748_v50 = vsel %vm2740_vm7, %v3255_v30, 0.0 }
0x11fb   : > { %2749 = vadd.xlane.f32.xlu1 %v2748_v50 }
0x1201   : > { %v2766_v35 = vpop.permute.xlu0 %2765 }
0x1202   : > { %vm2781_vm8 = vcmp.eq.s32.totalorder %v2759_v27, %v2766_v35 }
0x1214   : > { %2772 = vperm.xlu1 %3184, %v2767_v23  }
0x126e   : > { %v2750_v24 = vpop.xlane.xlu1 %2749 }
0x126f   : > { %3256 = vlog2.f32 %v2750_v24 }
0x1275   : > { %v3257_v25 = vpop.eup %3256 }
0x1276   : > { %v2752_v33 = vmul.f32 0.6931472, %v3257_v25 }
0x1278   : > { %v2753_v38 = vadd.f32 %v2752_v33, %v2744_v18 }
0x127a   : > { %v2754_v41 = vsub.f32 %v2737_v11, %v2753_v38 }
0x127c   : > { %v2784_v42 = vsel %vm2781_vm8, %v2754_v41, 0.0  ;;  %v2786_v43 = vsel %vm2783_vm9, %v2754_v41, 0.0 }
0x127d   : > { %v2787_v49 = vsel %vm2740_vm7, %v2784_v42, 0.0  ;;  %v2793_v53 = vsel %vm2740_vm7, %v2786_v43, 0.0 }
0x127e   : > { %2788 = vadd.xlane.f32.xlu1 %v2787_v49  ;;  %2794 = vadd.xlane.f32.xlu0 %v2793_v53 }
0x1286   : > { %v2773_v54 = vpop.permute.xlu1 %2772  ;;  %2820 = vadd.xlane.f32.xlu1 %v2819_v58 }
0x1287   : > { %vm2782_vm10 = vcmp.eq.s32.totalorder %v2759_v27, %v2773_v54 }
0x1288   : > { %v2785_v55 = vsel %vm2782_vm10, %v2754_v41, 0.0 }
0x1289   : > { %v2790_v52 = vsel %vm2740_vm7, %v2785_v55, 0.0 }
0x128a   : > { %2791 = vadd.xlane.f32.xlu2 %v2790_v52 }
0x12f1   : > { %v2789_v44 = vpop.xlane.xlu1 %2788  ;;  %v2795_v13 = vpop.xlane.xlu0 %2794 }
0x12f2   : > { %v2796_v59 = vsub.f32 0.0, %v2789_v44  ;;  %v2798_v60 = vsub.f32 0.0, %v2795_v13 }
0x12f4   : > { %v2802_v63 = vperm.slane %v2796_v59, %v2759_v27  ;;  %v2804_v0 = vperm.slane %v2798_v60, %v2759_v27 }
0x12f9   : > { %v2821_v2 = vpop.xlane.xlu1 %2820 }
0x12fa   : > { %2822 = vst.msk [vmem:[%s703_s0] sm:$0x7] %vm2815_vm14, %v2821_v2 }
0x12fd   : > { %v2792_v61 = vpop.xlane.xlu2 %2791 }
0x12fe   : > { %v2797_v62 = vsub.f32 0.0, %v2792_v61 }
0x1300   : > { %v2803_v51 = vperm.slane %v2797_v62, %v2759_v27 }
0x1302   : > { %v2806_v32 = vsel %vm2805_vm12, %v2803_v51, %v2802_v63 }
0x1303   : > { %v2808_v16 = vsel %vm2807_vm13, %v2804_v0, %v2806_v32 }
0x1304   : > { %v2810_v20 = vsel %vm2756_vm0, %v2808_v16, 0.0 }
0x1305   : > { %v2812_v1 = vsel %vm2811_vm11, %v2810_v20, 0.0 }
0x1306   : > { %2813 = vadd.xlane.f32.xlu2 %v2812_v1 }
0x1379   : > { %v2814_v21 = vpop.xlane.xlu2 %2813 }
0x137a   : > { %2816 = vst.msk [vmem:[%s699_s29] sm:$0x7] %vm2815_vm14, %v2814_v21 }
0x137b PF: > { %s32_s2 = sadd.s32 1, %s3264_s2  }
0x137c   : > { %p29_p4 = scmp.ge.s32.totalorder %s32_s2, 4  }
0x137e   :  { %31 = sbr.rel (!%p29_p4) target bundleno = 7 (0x7), region = 168 }

</bundles_post_ra>
